<compile_context>
chip_gen: v5e
topology: v5e:2x2
jax: 0.10.0
libtpu: 0.0.40
codegen_flags: <defaults>
</compile_context>

<pallas_src>
import functools
import math

import jax
import jax.numpy as jnp
from jax import lax
from jax.experimental import pallas as pl
from jax.experimental.pallas import tpu as pltpu


# -----------------------------------------------------------------------------
# Pallas kernel: fused multi-layer LSTM recurrence (single invocation, all-VMEM)
# -----------------------------------------------------------------------------
def _lstm_cell_update(gates_f32, c_prev, hidden_dim):
    """PyTorch gate order [i | f | g | o]. gates_f32: (B, 4H) f32."""
    H = hidden_dim
    sg = jax.nn.sigmoid(gates_f32)      # full-tile sigmoid (whole vregs, EUP)
    th = jnp.tanh(gates_f32)            # full-tile tanh    (whole vregs, EUP)
    i = sg[:, 0 * H:1 * H]
    f = sg[:, 1 * H:2 * H]
    g = th[:, 2 * H:3 * H]
    o = sg[:, 3 * H:4 * H]
    c_new = f * c_prev + i * g
    h_new = o * jnp.tanh(c_new)
    return h_new, c_new


def _fused_lstm_kernel(*refs, hidden_dim, num_layers, seq_len, unroll):
    """Fused L-layer LSTM recurrence over the whole sequence.

    refs layout:
      xp0_ref : (T, B, 4H) f32  layer-0 input projection (x @ W_ih0^T + b0), time-major
      u0_ref  : (H, 4H)         layer-0 recurrent weight W_hh0^T
      wu_refs : (L-1) x (2H, 4H)  concat([W_ih_l^T ; W_hh_l^T]) per upper layer
      b_refs  : (L-1) x (1, 4H)   (b_ih_l + b_hh_l) per upper layer
      h0_ref  : (L, B, H) f32   initial hidden states
      c0_ref  : (L, B, H) f32   initial cell states
      y_ref   : (T, B, H)       top-layer hidden per step (output sequence)
      hn_ref  : (L, B, H) f32   final hidden states
      cn_ref  : (L, B, H) f32   final cell states
    """
    H, L, T = hidden_dim, num_layers, seq_len
    xp0_ref = refs[0]
    u0_ref = refs[1]
    wu_refs = refs[2:2 + (L - 1)]
    b_refs = refs[2 + (L - 1):2 + 2 * (L - 1)]
    h0_ref = refs[2 + 2 * (L - 1)]
    c0_ref = refs[3 + 2 * (L - 1)]
    y_ref, hn_ref, cn_ref = refs[-3], refs[-2], refs[-1]

    # Load weights once; they stay live across the whole time loop.
    u0 = u0_ref[...]
    wus = [r[...] for r in wu_refs]
    bs = [r[...] for r in b_refs]

    def step(t, carry):
        hs, cs = carry
        hs, cs = list(hs), list(cs)

        # ---- layer 0: input projection already hoisted -> ONE recurrent matmul ----
        gates = xp0_ref[t] + jnp.dot(hs[0].astype(u0.dtype), u0,
                                     preferred_element_type=jnp.float32)
        h_new, c_new = _lstm_cell_update(gates, cs[0], H)
        hs[0], cs[0] = h_new, c_new
        out = h_new

        # ---- layers >= 1: single fused [x_t | h_prev] @ [W_ih ; W_hh] per step ----
        for l in range(1, L):
            xh = jnp.concatenate([out, hs[l]], axis=-1)        # (B, 2H)
            gates = jnp.dot(xh.astype(wus[l - 1].dtype), wus[l - 1],
                            preferred_element_type=jnp.float32) + bs[l - 1]
            h_new, c_new = _lstm_cell_update(gates, cs[l], H)
            hs[l], cs[l] = h_new, c_new
            out = h_new
        # TODO(synk): inter-layer dropout (p=0.1) is a training-time op; inference = identity.

        y_ref[t] = out.astype(y_ref.dtype)
        return tuple(hs), tuple(cs)

    init = (tuple(h0_ref[l] for l in range(L)),
            tuple(c0_ref[l] for l in range(L)))
    if unroll:
        hs_f, cs_f = lax.fori_loop(0, T, step, init, unroll=True)
    else:
        hs_f, cs_f = lax.fori_loop(0, T, step, init)

    # Final states written exactly once (no redundant per-step stores).
    for l in range(L):
        hn_ref[l] = hs_f[l].astype(hn_ref.dtype)
        cn_ref[l] = cs_f[l].astype(cn_ref.dtype)


def fused_lstm_forward(xp0, u0, wu_list, b_list, h_0, c_0, *, hidden_dim, out_dtype):
    """Run the fused recurrent kernel. xp0: (T, B, 4H) projected layer-0 input."""
    T, B, _ = xp0.shape
    L = h_0.shape[0]
    H = hidden_dim
    unroll = T <= 32                    # fully unroll short sequences for LLO scheduling
    # TODO(synk): for very long sequences that exceed VMEM, add a time-block grid
    #             (Tb-step blocks with h/c carried in VMEM scratch across grid steps).
    # TODO(synk): on v7x, split the batch across the two TensorCores (pl.core_map).

    operands = (xp0, u0, *wu_list, *b_list, h_0, c_0)
    vmem = pl.BlockSpec(memory_space=pltpu.MemorySpace.VMEM)

    # Everything is VMEM-resident for the whole call; raise the scoped VMEM limit only
    # when needed and keep it below v7x's 64 MiB physical VMEM.
    resident_bytes = sum(int(a.size) * a.dtype.itemsize for a in operands)
    resident_bytes += 4 * (T * B * H + 2 * L * B * H)            # outputs
    vmem_limit = None
    if resident_bytes > 24 * 1024 * 1024:
        vmem_limit = min(int(resident_bytes * 1.5) + (2 << 20), 60 * 1024 * 1024)
    compiler_params = (pltpu.CompilerParams(vmem_limit_bytes=vmem_limit)
                       if vmem_limit is not None else None)

    kernel = functools.partial(_fused_lstm_kernel, hidden_dim=H, num_layers=L,
                               seq_len=T, unroll=unroll)
    y, h_n, c_n = pl.pallas_call(
        kernel,
        out_shape=(jax.ShapeDtypeStruct((T, B, H), out_dtype),
                   jax.ShapeDtypeStruct((L, B, H), jnp.float32),
                   jax.ShapeDtypeStruct((L, B, H), jnp.float32)),
        in_specs=[vmem] * len(operands),
        out_specs=(vmem, vmem, vmem),
        compiler_params=compiler_params,
    )(*operands)
    return y, h_n, c_n


# -----------------------------------------------------------------------------
# StrokeRNN wrapper (parameter init + hoisted projection + fused kernel call)
# -----------------------------------------------------------------------------
class StrokeRNNPallas:
    """LSTM-based StrokeRNN; matches nn.LSTM(batch_first=True) inference semantics."""

    def __init__(self, input_dim, hidden_dim, num_layers=2, rnn_type="LSTM",
                 dropout=0.1, bidirectional=False, key=None,
                 compute_dtype=jnp.float32):
        if rnn_type.upper() != "LSTM":
            raise NotImplementedError("only rnn_type='LSTM'")   # TODO(synk): GRU variant
        if bidirectional:
            raise NotImplementedError("unidirectional only")    # TODO(synk): reverse pass
        self.input_dim = input_dim
        self.hidden_dim = hidden_dim
        self.num_layers = num_layers
        self.dropout = dropout if num_layers > 1 else 0.0       # inference: identity
        self.compute_dtype = compute_dtype   # set to jnp.bfloat16 on v6e/v7x for 2x weight BW

        if key is None:
            key = jax.random.PRNGKey(0)
        k = 1.0 / math.sqrt(hidden_dim)                          # PyTorch nn.LSTM init scale
        H = hidden_dim

        # Canonical f32 per-layer weights (also used by the lax.scan reference).
        self._w, self._u, self._b = [], [], []
        for layer in range(num_layers):
            in_dim = input_dim if layer == 0 else hidden_dim
            key, k1, k2, k3, k4 = jax.random.split(key, 5)
            w_ih = jax.random.uniform(k1, (4 * H, in_dim), jnp.float32, -k, k)
            w_hh = jax.random.uniform(k2, (4 * H, H), jnp.float32, -k, k)
            b_ih = jax.random.uniform(k3, (4 * H,), jnp.float32, -k, k)
            b_hh = jax.random.uniform(k4, (4 * H,), jnp.float32, -k, k)
            self._w.append(w_ih.T)                               # (in_dim, 4H)
            self._u.append(w_hh.T)                               # (H, 4H)
            self._b.append((b_ih + b_hh)[None, :])               # (1, 4H)

        # Kernel-form weights.
        cd = compute_dtype
        self.w0 = self._w[0].astype(cd)                          # (D, 4H) hoisted projection
        self.b0 = self._b[0]                                     # (1, 4H) f32
        self.u0 = self._u[0].astype(cd)                          # (H, 4H)
        self.wu = [jnp.concatenate([self._w[l], self._u[l]], axis=0).astype(cd)
                   for l in range(1, num_layers)]                # (2H, 4H) fused [W_ih; W_hh]
        self.bl = [self._b[l] for l in range(1, num_layers)]     # (1, 4H)

    def __call__(self, x, h_0=None, c_0=None):
        B, T, _ = x.shape
        H, L = self.hidden_dim, self.num_layers
        if h_0 is None:
            h_0 = jnp.zeros((L, B, H), jnp.float32)
        if c_0 is None:
            c_0 = jnp.zeros((L, B, H), jnp.float32)

        # Hoisted layer-0 input projection: one big (T*B, D) x (D, 4H) matmul for all
        # timesteps (off the serialized recurrence), emitted time-major for the kernel.
        xp0 = jnp.einsum("btd,dg->tbg", x.astype(self.compute_dtype), self.w0,
                         preferred_element_type=jnp.float32) + self.b0   # (T, B, 4H) f32

        y, h_n, c_n = fused_lstm_forward(
            xp0, self.u0, self.wu, self.bl, h_0, c_0,
            hidden_dim=H, out_dtype=x.dtype)

        output = jnp.transpose(y, (1, 0, 2))                     # (B, T, H) batch_first
        return output, (h_n, c_n)

    # Pure-JAX reference (lax.scan) for correctness checking.
    def reference(self, x, h_0=None, c_0=None):
        B, T, _ = x.shape
        H, L = self.hidden_dim, self.num_layers
        if h_0 is None:
            h_0 = jnp.zeros((L, B, H), jnp.float32)
        if c_0 is None:
            c_0 = jnp.zeros((L, B, H), jnp.float32)

        def layer(x_tm, w, u, b, h0, c0):
            def step(carry, x_t):
                h, c = carry
                gates = x_t @ w + h @ u + b[0]
                i = jax.nn.sigmoid(gates[:, 0 * H:1 * H])
                f = jax.nn.sigmoid(gates[:, 1 * H:2 * H])
                g = jnp.tanh(gates[:, 2 * H:3 * H])
                o = jax.nn.sigmoid(gates[:, 3 * H:4 * H])
                c = f * c + i * g
                h = o * jnp.tanh(c)
                return (h, c), h
            (hn, cn), ys = jax.lax.scan(step, (h0, c0), x_tm)
            return ys, hn, cn

        x_tm = jnp.transpose(x, (1, 0, 2))
        hs, cs = [], []
        layer_in = x_tm
        for l in range(L):
            y, hn, cn = layer(layer_in, self._w[l], self._u[l], self._b[l],
                              h_0[l], c_0[l])
            layer_in = y
            hs.append(hn)
            cs.append(cn)
        return jnp.transpose(layer_in, (1, 0, 2)), (jnp.stack(hs), jnp.stack(cs))


if __name__ == "__main__":
    key = jax.random.PRNGKey(0)
    k_param, k_x = jax.random.split(key)

    B, T, D, H, L = 2, 8, 8, 32, 2
    model = StrokeRNNPallas(input_dim=D, hidden_dim=H, num_layers=L, key=k_param)
    x = jax.random.normal(k_x, (B, T, D), jnp.float32)

    out, (h_n, c_n) = model(x)
    jax.block_until_ready((out, h_n, c_n))

    assert out.shape == (B, T, H)
    assert h_n.shape == (L, B, H) and c_n.shape == (L, B, H)

    ref_out, (ref_h, ref_c) = model.reference(x)
    assert jnp.allclose(out, ref_out, atol=1e-3, rtol=1e-3)
    assert jnp.allclose(h_n, ref_h, atol=1e-3, rtol=1e-3)
    assert jnp.allclose(c_n, ref_c, atol=1e-3, rtol=1e-3)

    print("KERNEL_OK")
</pallas_src>

<mosaic_0001>
module attributes {stable_mosaic.version = 11 : i64} {
  func.func @_fused_lstm_kernel(%arg0: memref<8x2x128xf32, #tpu.memory_space<vmem>>, %arg1: memref<32x128xf32, #tpu.memory_space<vmem>>, %arg2: memref<64x128xf32, #tpu.memory_space<vmem>>, %arg3: memref<1x128xf32, #tpu.memory_space<vmem>>, %arg4: memref<2x2x32xf32, #tpu.memory_space<vmem>>, %arg5: memref<2x2x32xf32, #tpu.memory_space<vmem>>, %arg6: memref<8x2x32xf32, #tpu.memory_space<vmem>>, %arg7: memref<2x2x32xf32, #tpu.memory_space<vmem>>, %arg8: memref<2x2x32xf32, #tpu.memory_space<vmem>>) attributes {dimension_semantics = [], scalar_prefetch = 0 : i64, scratch_operands = 0 : i64, tpu.core_type = #tpu.core_type<tc>} {
    %c0 = arith.constant 0 : index
    %c0_0 = arith.constant 0 : index
    %0 = vector.load %arg1[%c0, %c0_0] : memref<32x128xf32, #tpu.memory_space<vmem>>, vector<32x128xf32>
    %c0_1 = arith.constant 0 : index
    %c0_2 = arith.constant 0 : index
    %1 = vector.load %arg2[%c0_1, %c0_2] : memref<64x128xf32, #tpu.memory_space<vmem>>, vector<64x128xf32>
    %c0_3 = arith.constant 0 : index
    %c0_4 = arith.constant 0 : index
    %2 = vector.load %arg3[%c0_3, %c0_4] : memref<1x128xf32, #tpu.memory_space<vmem>>, vector<1x128xf32>
    %c0_5 = arith.constant 0 : index
    %c0_6 = arith.constant 0 : index
    %c0_7 = arith.constant 0 : index
    %3 = vector.load %arg4[%c0_5, %c0_6, %c0_7] : memref<2x2x32xf32, #tpu.memory_space<vmem>>, vector<1x2x32xf32>
    %4 = vector.shape_cast %3 : vector<1x2x32xf32> to vector<2x32xf32>
    %c1 = arith.constant 1 : index
    %c0_8 = arith.constant 0 : index
    %c0_9 = arith.constant 0 : index
    %5 = vector.load %arg4[%c1, %c0_8, %c0_9] : memref<2x2x32xf32, #tpu.memory_space<vmem>>, vector<1x2x32xf32>
    %6 = vector.shape_cast %5 : vector<1x2x32xf32> to vector<2x32xf32>
    %c0_10 = arith.constant 0 : index
    %c0_11 = arith.constant 0 : index
    %c0_12 = arith.constant 0 : index
    %7 = vector.load %arg5[%c0_10, %c0_11, %c0_12] : memref<2x2x32xf32, #tpu.memory_space<vmem>>, vector<1x2x32xf32>
    %8 = vector.shape_cast %7 : vector<1x2x32xf32> to vector<2x32xf32>
    %c1_13 = arith.constant 1 : index
    %c0_14 = arith.constant 0 : index
    %c0_15 = arith.constant 0 : index
    %9 = vector.load %arg5[%c1_13, %c0_14, %c0_15] : memref<2x2x32xf32, #tpu.memory_space<vmem>>, vector<1x2x32xf32>
    %10 = vector.shape_cast %9 : vector<1x2x32xf32> to vector<2x32xf32>
    %c0_i32 = arith.constant 0 : i32
    %11 = arith.index_cast %c0_i32 : i32 to index
    %c0_16 = arith.constant 0 : index
    %c0_17 = arith.constant 0 : index
    %12 = vector.load %arg0[%11, %c0_16, %c0_17] : memref<8x2x128xf32, #tpu.memory_space<vmem>>, vector<1x2x128xf32>
    %13 = vector.shape_cast %12 : vector<1x2x128xf32> to vector<2x128xf32>
    %cst = arith.constant dense<0.000000e+00> : vector<2x128xf32>
    %14 = tpu.matmul %4, %0, %cst {dimension_numbers = #tpu.dot_dimension_numbers<[1], [0], [0], [1], [0, 0, 1, 1], [], []>} : vector<2x32xf32>, vector<32x128xf32>, vector<2x128xf32> -> vector<2x128xf32>
    %15 = arith.addf %13, %14 : vector<2x128xf32>
    %16 = arith.negf %15 : vector<2x128xf32>
    %17 = math.exp %16 : vector<2x128xf32>
    %cst_18 = arith.constant 1.000000e+00 : f32
    %18 = vector.broadcast %cst_18 : f32 to vector<2x128xf32>
    %19 = arith.addf %18, %17 : vector<2x128xf32>
    %20 = arith.divf %18, %19 : vector<2x128xf32>
    %21 = math.tanh %15 : vector<2x128xf32>
    %22 = vector.extract_strided_slice %20 {offsets = [0, 0], sizes = [2, 32], strides = [1, 1]} : vector<2x128xf32> to vector<2x32xf32>
    %23 = vector.extract_strided_slice %20 {offsets = [0, 32], sizes = [2, 32], strides = [1, 1]} : vector<2x128xf32> to vector<2x32xf32>
    %24 = vector.extract_strided_slice %21 {offsets = [0, 64], sizes = [2, 32], strides = [1, 1]} : vector<2x128xf32> to vector<2x32xf32>
    %25 = vector.extract_strided_slice %20 {offsets = [0, 96], sizes = [2, 32], strides = [1, 1]} : vector<2x128xf32> to vector<2x32xf32>
    %26 = arith.mulf %23, %8 : vector<2x32xf32>
    %27 = arith.mulf %22, %24 : vector<2x32xf32>
    %28 = arith.addf %26, %27 : vector<2x32xf32>
    %29 = math.tanh %28 : vector<2x32xf32>
    %30 = arith.mulf %25, %29 : vector<2x32xf32>
    %31 = tpu.concatenate %30, %6 in 1 : vector<2x32xf32>, vector<2x32xf32> -> vector<2x64xf32>
    %cst_19 = arith.constant dense<0.000000e+00> : vector<2x128xf32>
    %32 = tpu.matmul %31, %1, %cst_19 {dimension_numbers = #tpu.dot_dimension_numbers<[1], [0], [0], [1], [0, 0, 1, 1], [], []>} : vector<2x64xf32>, vector<64x128xf32>, vector<2x128xf32> -> vector<2x128xf32>
    %33 = vector.broadcast %2 : vector<1x128xf32> to vector<2x128xf32>
    %34 = arith.addf %32, %33 : vector<2x128xf32>
    %35 = arith.negf %34 : vector<2x128xf32>
    %36 = math.exp %35 : vector<2x128xf32>
    %cst_20 = arith.constant 1.000000e+00 : f32
    %37 = vector.broadcast %cst_20 : f32 to vector<2x128xf32>
    %38 = arith.addf %37, %36 : vector<2x128xf32>
    %39 = arith.divf %37, %38 : vector<2x128xf32>
    %40 = math.tanh %34 : vector<2x128xf32>
    %41 = vector.extract_strided_slice %39 {offsets = [0, 0], sizes = [2, 32], strides = [1, 1]} : vector<2x128xf32> to vector<2x32xf32>
    %42 = vector.extract_strided_slice %39 {offsets = [0, 32], sizes = [2, 32], strides = [1, 1]} : vector<2x128xf32> to vector<2x32xf32>
    %43 = vector.extract_strided_slice %40 {offsets = [0, 64], sizes = [2, 32], strides = [1, 1]} : vector<2x128xf32> to vector<2x32xf32>
    %44 = vector.extract_strided_slice %39 {offsets = [0, 96], sizes = [2, 32], strides = [1, 1]} : vector<2x128xf32> to vector<2x32xf32>
    %45 = arith.mulf %42, %10 : vector<2x32xf32>
    %46 = arith.mulf %41, %43 : vector<2x32xf32>
    %47 = arith.addf %45, %46 : vector<2x32xf32>
    %48 = math.tanh %47 : vector<2x32xf32>
    %49 = arith.mulf %44, %48 : vector<2x32xf32>
    %50 = arith.index_cast %c0_i32 : i32 to index
    %c0_21 = arith.constant 0 : index
    %c0_22 = arith.constant 0 : index
    %51 = vector.load %arg6[%50, %c0_21, %c0_22] : memref<8x2x32xf32, #tpu.memory_space<vmem>>, vector<1x2x32xf32>
    %52 = vector.shape_cast %51 : vector<1x2x32xf32> to vector<2x32xf32>
    %53 = vector.shape_cast %49 : vector<2x32xf32> to vector<1x2x32xf32>
    tpu.vector_store %arg6[%50, %c0_21, %c0_22], %53 {strides = array<i32>} : memref<8x2x32xf32, #tpu.memory_space<vmem>>, vector<1x2x32xf32>,
    %c1_i32 = arith.constant 1 : i32
    %54 = arith.index_cast %c1_i32 : i32 to index
    %c0_23 = arith.constant 0 : index
    %c0_24 = arith.constant 0 : index
    %55 = vector.load %arg0[%54, %c0_23, %c0_24] : memref<8x2x128xf32, #tpu.memory_space<vmem>>, vector<1x2x128xf32>
    %56 = vector.shape_cast %55 : vector<1x2x128xf32> to vector<2x128xf32>
    %cst_25 = arith.constant dense<0.000000e+00> : vector<2x128xf32>
    %57 = tpu.matmul %30, %0, %cst_25 {dimension_numbers = #tpu.dot_dimension_numbers<[1], [0], [0], [1], [0, 0, 1, 1], [], []>} : vector<2x32xf32>, vector<32x128xf32>, vector<2x128xf32> -> vector<2x128xf32>
    %58 = arith.addf %56, %57 : vector<2x128xf32>
    %59 = arith.negf %58 : vector<2x128xf32>
    %60 = math.exp %59 : vector<2x128xf32>
    %cst_26 = arith.constant 1.000000e+00 : f32
    %61 = vector.broadcast %cst_26 : f32 to vector<2x128xf32>
    %62 = arith.addf %61, %60 : vector<2x128xf32>
    %63 = arith.divf %61, %62 : vector<2x128xf32>
    %64 = math.tanh %58 : vector<2x128xf32>
    %65 = vector.extract_strided_slice %63 {offsets = [0, 0], sizes = [2, 32], strides = [1, 1]} : vector<2x128xf32> to vector<2x32xf32>
    %66 = vector.extract_strided_slice %63 {offsets = [0, 32], sizes = [2, 32], strides = [1, 1]} : vector<2x128xf32> to vector<2x32xf32>
    %67 = vector.extract_strided_slice %64 {offsets = [0, 64], sizes = [2, 32], strides = [1, 1]} : vector<2x128xf32> to vector<2x32xf32>
    %68 = vector.extract_strided_slice %63 {offsets = [0, 96], sizes = [2, 32], strides = [1, 1]} : vector<2x128xf32> to vector<2x32xf32>
    %69 = arith.mulf %66, %28 : vector<2x32xf32>
    %70 = arith.mulf %65, %67 : vector<2x32xf32>
    %71 = arith.addf %69, %70 : vector<2x32xf32>
    %72 = math.tanh %71 : vector<2x32xf32>
    %73 = arith.mulf %68, %72 : vector<2x32xf32>
    %74 = tpu.concatenate %73, %49 in 1 : vector<2x32xf32>, vector<2x32xf32> -> vector<2x64xf32>
    %cst_27 = arith.constant dense<0.000000e+00> : vector<2x128xf32>
    %75 = tpu.matmul %74, %1, %cst_27 {dimension_numbers = #tpu.dot_dimension_numbers<[1], [0], [0], [1], [0, 0, 1, 1], [], []>} : vector<2x64xf32>, vector<64x128xf32>, vector<2x128xf32> -> vector<2x128xf32>
    %76 = vector.broadcast %2 : vector<1x128xf32> to vector<2x128xf32>
    %77 = arith.addf %75, %76 : vector<2x128xf32>
    %78 = arith.negf %77 : vector<2x128xf32>
    %79 = math.exp %78 : vector<2x128xf32>
    %cst_28 = arith.constant 1.000000e+00 : f32
    %80 = vector.broadcast %cst_28 : f32 to vector<2x128xf32>
    %81 = arith.addf %80, %79 : vector<2x128xf32>
    %82 = arith.divf %80, %81 : vector<2x128xf32>
    %83 = math.tanh %77 : vector<2x128xf32>
    %84 = vector.extract_strided_slice %82 {offsets = [0, 0], sizes = [2, 32], strides = [1, 1]} : vector<2x128xf32> to vector<2x32xf32>
    %85 = vector.extract_strided_slice %82 {offsets = [0, 32], sizes = [2, 32], strides = [1, 1]} : vector<2x128xf32> to vector<2x32xf32>
    %86 = vector.extract_strided_slice %83 {offsets = [0, 64], sizes = [2, 32], strides = [1, 1]} : vector<2x128xf32> to vector<2x32xf32>
    %87 = vector.extract_strided_slice %82 {offsets = [0, 96], sizes = [2, 32], strides = [1, 1]} : vector<2x128xf32> to vector<2x32xf32>
    %88 = arith.mulf %85, %47 : vector<2x32xf32>
    %89 = arith.mulf %84, %86 : vector<2x32xf32>
    %90 = arith.addf %88, %89 : vector<2x32xf32>
    %91 = math.tanh %90 : vector<2x32xf32>
    %92 = arith.mulf %87, %91 : vector<2x32xf32>
    %93 = arith.index_cast %c1_i32 : i32 to index
    %c0_29 = arith.constant 0 : index
    %c0_30 = arith.constant 0 : index
    %94 = vector.load %arg6[%93, %c0_29, %c0_30] : memref<8x2x32xf32, #tpu.memory_space<vmem>>, vector<1x2x32xf32>
    %95 = vector.shape_cast %94 : vector<1x2x32xf32> to vector<2x32xf32>
    %96 = vector.shape_cast %92 : vector<2x32xf32> to vector<1x2x32xf32>
    tpu.vector_store %arg6[%93, %c0_29, %c0_30], %96 {strides = array<i32>} : memref<8x2x32xf32, #tpu.memory_space<vmem>>, vector<1x2x32xf32>,
    %c2_i32 = arith.constant 2 : i32
    %97 = arith.index_cast %c2_i32 : i32 to index
    %c0_31 = arith.constant 0 : index
    %c0_32 = arith.constant 0 : index
    %98 = vector.load %arg0[%97, %c0_31, %c0_32] : memref<8x2x128xf32, #tpu.memory_space<vmem>>, vector<1x2x128xf32>
    %99 = vector.shape_cast %98 : vector<1x2x128xf32> to vector<2x128xf32>
    %cst_33 = arith.constant dense<0.000000e+00> : vector<2x128xf32>
    %100 = tpu.matmul %73, %0, %cst_33 {dimension_numbers = #tpu.dot_dimension_numbers<[1], [0], [0], [1], [0, 0, 1, 1], [], []>} : vector<2x32xf32>, vector<32x128xf32>, vector<2x128xf32> -> vector<2x128xf32>
    %101 = arith.addf %99, %100 : vector<2x128xf32>
    %102 = arith.negf %101 : vector<2x128xf32>
    %103 = math.exp %102 : vector<2x128xf32>
    %cst_34 = arith.constant 1.000000e+00 : f32
    %104 = vector.broadcast %cst_34 : f32 to vector<2x128xf32>
    %105 = arith.addf %104, %103 : vector<2x128xf32>
    %106 = arith.divf %104, %105 : vector<2x128xf32>
    %107 = math.tanh %101 : vector<2x128xf32>
    %108 = vector.extract_strided_slice %106 {offsets = [0, 0], sizes = [2, 32], strides = [1, 1]} : vector<2x128xf32> to vector<2x32xf32>
    %109 = vector.extract_strided_slice %106 {offsets = [0, 32], sizes = [2, 32], strides = [1, 1]} : vector<2x128xf32> to vector<2x32xf32>
    %110 = vector.extract_strided_slice %107 {offsets = [0, 64], sizes = [2, 32], strides = [1, 1]} : vector<2x128xf32> to vector<2x32xf32>
    %111 = vector.extract_strided_slice %106 {offsets = [0, 96], sizes = [2, 32], strides = [1, 1]} : vector<2x128xf32> to vector<2x32xf32>
    %112 = arith.mulf %109, %71 : vector<2x32xf32>
    %113 = arith.mulf %108, %110 : vector<2x32xf32>
    %114 = arith.addf %112, %113 : vector<2x32xf32>
    %115 = math.tanh %114 : vector<2x32xf32>
    %116 = arith.mulf %111, %115 : vector<2x32xf32>
    %117 = tpu.concatenate %116, %92 in 1 : vector<2x32xf32>, vector<2x32xf32> -> vector<2x64xf32>
    %cst_35 = arith.constant dense<0.000000e+00> : vector<2x128xf32>
    %118 = tpu.matmul %117, %1, %cst_35 {dimension_numbers = #tpu.dot_dimension_numbers<[1], [0], [0], [1], [0, 0, 1, 1], [], []>} : vector<2x64xf32>, vector<64x128xf32>, vector<2x128xf32> -> vector<2x128xf32>
    %119 = vector.broadcast %2 : vector<1x128xf32> to vector<2x128xf32>
    %120 = arith.addf %118, %119 : vector<2x128xf32>
    %121 = arith.negf %120 : vector<2x128xf32>
    %122 = math.exp %121 : vector<2x128xf32>
    %cst_36 = arith.constant 1.000000e+00 : f32
    %123 = vector.broadcast %cst_36 : f32 to vector<2x128xf32>
    %124 = arith.addf %123, %122 : vector<2x128xf32>
    %125 = arith.divf %123, %124 : vector<2x128xf32>
    %126 = math.tanh %120 : vector<2x128xf32>
    %127 = vector.extract_strided_slice %125 {offsets = [0, 0], sizes = [2, 32], strides = [1, 1]} : vector<2x128xf32> to vector<2x32xf32>
    %128 = vector.extract_strided_slice %125 {offsets = [0, 32], sizes = [2, 32], strides = [1, 1]} : vector<2x128xf32> to vector<2x32xf32>
    %129 = vector.extract_strided_slice %126 {offsets = [0, 64], sizes = [2, 32], strides = [1, 1]} : vector<2x128xf32> to vector<2x32xf32>
    %130 = vector.extract_strided_slice %125 {offsets = [0, 96], sizes = [2, 32], strides = [1, 1]} : vector<2x128xf32> to vector<2x32xf32>
    %131 = arith.mulf %128, %90 : vector<2x32xf32>
    %132 = arith.mulf %127, %129 : vector<2x32xf32>
    %133 = arith.addf %131, %132 : vector<2x32xf32>
    %134 = math.tanh %133 : vector<2x32xf32>
    %135 = arith.mulf %130, %134 : vector<2x32xf32>
    %136 = arith.index_cast %c2_i32 : i32 to index
    %c0_37 = arith.constant 0 : index
    %c0_38 = arith.constant 0 : index
    %137 = vector.load %arg6[%136, %c0_37, %c0_38] : memref<8x2x32xf32, #tpu.memory_space<vmem>>, vector<1x2x32xf32>
    %138 = vector.shape_cast %137 : vector<1x2x32xf32> to vector<2x32xf32>
    %139 = vector.shape_cast %135 : vector<2x32xf32> to vector<1x2x32xf32>
    tpu.vector_store %arg6[%136, %c0_37, %c0_38], %139 {strides = array<i32>} : memref<8x2x32xf32, #tpu.memory_space<vmem>>, vector<1x2x32xf32>,
    %c3_i32 = arith.constant 3 : i32
    %140 = arith.index_cast %c3_i32 : i32 to index
    %c0_39 = arith.constant 0 : index
    %c0_40 = arith.constant 0 : index
    %141 = vector.load %arg0[%140, %c0_39, %c0_40] : memref<8x2x128xf32, #tpu.memory_space<vmem>>, vector<1x2x128xf32>
    %142 = vector.shape_cast %141 : vector<1x2x128xf32> to vector<2x128xf32>
    %cst_41 = arith.constant dense<0.000000e+00> : vector<2x128xf32>
    %143 = tpu.matmul %116, %0, %cst_41 {dimension_numbers = #tpu.dot_dimension_numbers<[1], [0], [0], [1], [0, 0, 1, 1], [], []>} : vector<2x32xf32>, vector<32x128xf32>, vector<2x128xf32> -> vector<2x128xf32>
    %144 = arith.addf %142, %143 : vector<2x128xf32>
    %145 = arith.negf %144 : vector<2x128xf32>
    %146 = math.exp %145 : vector<2x128xf32>
    %cst_42 = arith.constant 1.000000e+00 : f32
    %147 = vector.broadcast %cst_42 : f32 to vector<2x128xf32>
    %148 = arith.addf %147, %146 : vector<2x128xf32>
    %149 = arith.divf %147, %148 : vector<2x128xf32>
    %150 = math.tanh %144 : vector<2x128xf32>
    %151 = vector.extract_strided_slice %149 {offsets = [0, 0], sizes = [2, 32], strides = [1, 1]} : vector<2x128xf32> to vector<2x32xf32>
    %152 = vector.extract_strided_slice %149 {offsets = [0, 32], sizes = [2, 32], strides = [1, 1]} : vector<2x128xf32> to vector<2x32xf32>
    %153 = vector.extract_strided_slice %150 {offsets = [0, 64], sizes = [2, 32], strides = [1, 1]} : vector<2x128xf32> to vector<2x32xf32>
    %154 = vector.extract_strided_slice %149 {offsets = [0, 96], sizes = [2, 32], strides = [1, 1]} : vector<2x128xf32> to vector<2x32xf32>
    %155 = arith.mulf %152, %114 : vector<2x32xf32>
    %156 = arith.mulf %151, %153 : vector<2x32xf32>
    %157 = arith.addf %155, %156 : vector<2x32xf32>
    %158 = math.tanh %157 : vector<2x32xf32>
    %159 = arith.mulf %154, %158 : vector<2x32xf32>
    %160 = tpu.concatenate %159, %135 in 1 : vector<2x32xf32>, vector<2x32xf32> -> vector<2x64xf32>
    %cst_43 = arith.constant dense<0.000000e+00> : vector<2x128xf32>
    %161 = tpu.matmul %160, %1, %cst_43 {dimension_numbers = #tpu.dot_dimension_numbers<[1], [0], [0], [1], [0, 0, 1, 1], [], []>} : vector<2x64xf32>, vector<64x128xf32>, vector<2x128xf32> -> vector<2x128xf32>
    %162 = vector.broadcast %2 : vector<1x128xf32> to vector<2x128xf32>
    %163 = arith.addf %161, %162 : vector<2x128xf32>
    %164 = arith.negf %163 : vector<2x128xf32>
    %165 = math.exp %164 : vector<2x128xf32>
    %cst_44 = arith.constant 1.000000e+00 : f32
    %166 = vector.broadcast %cst_44 : f32 to vector<2x128xf32>
    %167 = arith.addf %166, %165 : vector<2x128xf32>
    %168 = arith.divf %166, %167 : vector<2x128xf32>
    %169 = math.tanh %163 : vector<2x128xf32>
    %170 = vector.extract_strided_slice %168 {offsets = [0, 0], sizes = [2, 32], strides = [1, 1]} : vector<2x128xf32> to vector<2x32xf32>
    %171 = vector.extract_strided_slice %168 {offsets = [0, 32], sizes = [2, 32], strides = [1, 1]} : vector<2x128xf32> to vector<2x32xf32>
    %172 = vector.extract_strided_slice %169 {offsets = [0, 64], sizes = [2, 32], strides = [1, 1]} : vector<2x128xf32> to vector<2x32xf32>
    %173 = vector.extract_strided_slice %168 {offsets = [0, 96], sizes = [2, 32], strides = [1, 1]} : vector<2x128xf32> to vector<2x32xf32>
    %174 = arith.mulf %171, %133 : vector<2x32xf32>
    %175 = arith.mulf %170, %172 : vector<2x32xf32>
    %176 = arith.addf %174, %175 : vector<2x32xf32>
    %177 = math.tanh %176 : vector<2x32xf32>
    %178 = arith.mulf %173, %177 : vector<2x32xf32>
    %179 = arith.index_cast %c3_i32 : i32 to index
    %c0_45 = arith.constant 0 : index
    %c0_46 = arith.constant 0 : index
    %180 = vector.load %arg6[%179, %c0_45, %c0_46] : memref<8x2x32xf32, #tpu.memory_space<vmem>>, vector<1x2x32xf32>
    %181 = vector.shape_cast %180 : vector<1x2x32xf32> to vector<2x32xf32>
    %182 = vector.shape_cast %178 : vector<2x32xf32> to vector<1x2x32xf32>
    tpu.vector_store %arg6[%179, %c0_45, %c0_46], %182 {strides = array<i32>} : memref<8x2x32xf32, #tpu.memory_space<vmem>>, vector<1x2x32xf32>,
    %c4_i32 = arith.constant 4 : i32
    %183 = arith.index_cast %c4_i32 : i32 to index
    %c0_47 = arith.constant 0 : index
    %c0_48 = arith.constant 0 : index
    %184 = vector.load %arg0[%183, %c0_47, %c0_48] : memref<8x2x128xf32, #tpu.memory_space<vmem>>, vector<1x2x128xf32>
    %185 = vector.shape_cast %184 : vector<1x2x128xf32> to vector<2x128xf32>
    %cst_49 = arith.constant dense<0.000000e+00> : vector<2x128xf32>
    %186 = tpu.matmul %159, %0, %cst_49 {dimension_numbers = #tpu.dot_dimension_numbers<[1], [0], [0], [1], [0, 0, 1, 1], [], []>} : vector<2x32xf32>, vector<32x128xf32>, vector<2x128xf32> -> vector<2x128xf32>
    %187 = arith.addf %185, %186 : vector<2x128xf32>
    %188 = arith.negf %187 : vector<2x128xf32>
    %189 = math.exp %188 : vector<2x128xf32>
    %cst_50 = arith.constant 1.000000e+00 : f32
    %190 = vector.broadcast %cst_50 : f32 to vector<2x128xf32>
    %191 = arith.addf %190, %189 : vector<2x128xf32>
    %192 = arith.divf %190, %191 : vector<2x128xf32>
    %193 = math.tanh %187 : vector<2x128xf32>
    %194 = vector.extract_strided_slice %192 {offsets = [0, 0], sizes = [2, 32], strides = [1, 1]} : vector<2x128xf32> to vector<2x32xf32>
    %195 = vector.extract_strided_slice %192 {offsets = [0, 32], sizes = [2, 32], strides = [1, 1]} : vector<2x128xf32> to vector<2x32xf32>
    %196 = vector.extract_strided_slice %193 {offsets = [0, 64], sizes = [2, 32], strides = [1, 1]} : vector<2x128xf32> to vector<2x32xf32>
    %197 = vector.extract_strided_slice %192 {offsets = [0, 96], sizes = [2, 32], strides = [1, 1]} : vector<2x128xf32> to vector<2x32xf32>
    %198 = arith.mulf %195, %157 : vector<2x32xf32>
    %199 = arith.mulf %194, %196 : vector<2x32xf32>
    %200 = arith.addf %198, %199 : vector<2x32xf32>
    %201 = math.tanh %200 : vector<2x32xf32>
    %202 = arith.mulf %197, %201 : vector<2x32xf32>
    %203 = tpu.concatenate %202, %178 in 1 : vector<2x32xf32>, vector<2x32xf32> -> vector<2x64xf32>
    %cst_51 = arith.constant dense<0.000000e+00> : vector<2x128xf32>
    %204 = tpu.matmul %203, %1, %cst_51 {dimension_numbers = #tpu.dot_dimension_numbers<[1], [0], [0], [1], [0, 0, 1, 1], [], []>} : vector<2x64xf32>, vector<64x128xf32>, vector<2x128xf32> -> vector<2x128xf32>
    %205 = vector.broadcast %2 : vector<1x128xf32> to vector<2x128xf32>
    %206 = arith.addf %204, %205 : vector<2x128xf32>
    %207 = arith.negf %206 : vector<2x128xf32>
    %208 = math.exp %207 : vector<2x128xf32>
    %cst_52 = arith.constant 1.000000e+00 : f32
    %209 = vector.broadcast %cst_52 : f32 to vector<2x128xf32>
    %210 = arith.addf %209, %208 : vector<2x128xf32>
    %211 = arith.divf %209, %210 : vector<2x128xf32>
    %212 = math.tanh %206 : vector<2x128xf32>
    %213 = vector.extract_strided_slice %211 {offsets = [0, 0], sizes = [2, 32], strides = [1, 1]} : vector<2x128xf32> to vector<2x32xf32>
    %214 = vector.extract_strided_slice %211 {offsets = [0, 32], sizes = [2, 32], strides = [1, 1]} : vector<2x128xf32> to vector<2x32xf32>
    %215 = vector.extract_strided_slice %212 {offsets = [0, 64], sizes = [2, 32], strides = [1, 1]} : vector<2x128xf32> to vector<2x32xf32>
    %216 = vector.extract_strided_slice %211 {offsets = [0, 96], sizes = [2, 32], strides = [1, 1]} : vector<2x128xf32> to vector<2x32xf32>
    %217 = arith.mulf %214, %176 : vector<2x32xf32>
    %218 = arith.mulf %213, %215 : vector<2x32xf32>
    %219 = arith.addf %217, %218 : vector<2x32xf32>
    %220 = math.tanh %219 : vector<2x32xf32>
    %221 = arith.mulf %216, %220 : vector<2x32xf32>
    %222 = arith.index_cast %c4_i32 : i32 to index
    %c0_53 = arith.constant 0 : index
    %c0_54 = arith.constant 0 : index
    %223 = vector.load %arg6[%222, %c0_53, %c0_54] : memref<8x2x32xf32, #tpu.memory_space<vmem>>, vector<1x2x32xf32>
    %224 = vector.shape_cast %223 : vector<1x2x32xf32> to vector<2x32xf32>
    %225 = vector.shape_cast %221 : vector<2x32xf32> to vector<1x2x32xf32>
    tpu.vector_store %arg6[%222, %c0_53, %c0_54], %225 {strides = array<i32>} : memref<8x2x32xf32, #tpu.memory_space<vmem>>, vector<1x2x32xf32>,
    %c5_i32 = arith.constant 5 : i32
    %226 = arith.index_cast %c5_i32 : i32 to index
    %c0_55 = arith.constant 0 : index
    %c0_56 = arith.constant 0 : index
    %227 = vector.load %arg0[%226, %c0_55, %c0_56] : memref<8x2x128xf32, #tpu.memory_space<vmem>>, vector<1x2x128xf32>
    %228 = vector.shape_cast %227 : vector<1x2x128xf32> to vector<2x128xf32>
    %cst_57 = arith.constant dense<0.000000e+00> : vector<2x128xf32>
    %229 = tpu.matmul %202, %0, %cst_57 {dimension_numbers = #tpu.dot_dimension_numbers<[1], [0], [0], [1], [0, 0, 1, 1], [], []>} : vector<2x32xf32>, vector<32x128xf32>, vector<2x128xf32> -> vector<2x128xf32>
    %230 = arith.addf %228, %229 : vector<2x128xf32>
    %231 = arith.negf %230 : vector<2x128xf32>
    %232 = math.exp %231 : vector<2x128xf32>
    %cst_58 = arith.constant 1.000000e+00 : f32
    %233 = vector.broadcast %cst_58 : f32 to vector<2x128xf32>
    %234 = arith.addf %233, %232 : vector<2x128xf32>
    %235 = arith.divf %233, %234 : vector<2x128xf32>
    %236 = math.tanh %230 : vector<2x128xf32>
    %237 = vector.extract_strided_slice %235 {offsets = [0, 0], sizes = [2, 32], strides = [1, 1]} : vector<2x128xf32> to vector<2x32xf32>
    %238 = vector.extract_strided_slice %235 {offsets = [0, 32], sizes = [2, 32], strides = [1, 1]} : vector<2x128xf32> to vector<2x32xf32>
    %239 = vector.extract_strided_slice %236 {offsets = [0, 64], sizes = [2, 32], strides = [1, 1]} : vector<2x128xf32> to vector<2x32xf32>
    %240 = vector.extract_strided_slice %235 {offsets = [0, 96], sizes = [2, 32], strides = [1, 1]} : vector<2x128xf32> to vector<2x32xf32>
    %241 = arith.mulf %238, %200 : vector<2x32xf32>
    %242 = arith.mulf %237, %239 : vector<2x32xf32>
    %243 = arith.addf %241, %242 : vector<2x32xf32>
    %244 = math.tanh %243 : vector<2x32xf32>
    %245 = arith.mulf %240, %244 : vector<2x32xf32>
    %246 = tpu.concatenate %245, %221 in 1 : vector<2x32xf32>, vector<2x32xf32> -> vector<2x64xf32>
    %cst_59 = arith.constant dense<0.000000e+00> : vector<2x128xf32>
    %247 = tpu.matmul %246, %1, %cst_59 {dimension_numbers = #tpu.dot_dimension_numbers<[1], [0], [0], [1], [0, 0, 1, 1], [], []>} : vector<2x64xf32>, vector<64x128xf32>, vector<2x128xf32> -> vector<2x128xf32>
    %248 = vector.broadcast %2 : vector<1x128xf32> to vector<2x128xf32>
    %249 = arith.addf %247, %248 : vector<2x128xf32>
    %250 = arith.negf %249 : vector<2x128xf32>
    %251 = math.exp %250 : vector<2x128xf32>
    %cst_60 = arith.constant 1.000000e+00 : f32
    %252 = vector.broadcast %cst_60 : f32 to vector<2x128xf32>
    %253 = arith.addf %252, %251 : vector<2x128xf32>
    %254 = arith.divf %252, %253 : vector<2x128xf32>
    %255 = math.tanh %249 : vector<2x128xf32>
    %256 = vector.extract_strided_slice %254 {offsets = [0, 0], sizes = [2, 32], strides = [1, 1]} : vector<2x128xf32> to vector<2x32xf32>
    %257 = vector.extract_strided_slice %254 {offsets = [0, 32], sizes = [2, 32], strides = [1, 1]} : vector<2x128xf32> to vector<2x32xf32>
    %258 = vector.extract_strided_slice %255 {offsets = [0, 64], sizes = [2, 32], strides = [1, 1]} : vector<2x128xf32> to vector<2x32xf32>
    %259 = vector.extract_strided_slice %254 {offsets = [0, 96], sizes = [2, 32], strides = [1, 1]} : vector<2x128xf32> to vector<2x32xf32>
    %260 = arith.mulf %257, %219 : vector<2x32xf32>
    %261 = arith.mulf %256, %258 : vector<2x32xf32>
    %262 = arith.addf %260, %261 : vector<2x32xf32>
    %263 = math.tanh %262 : vector<2x32xf32>
    %264 = arith.mulf %259, %263 : vector<2x32xf32>
    %265 = arith.index_cast %c5_i32 : i32 to index
    %c0_61 = arith.constant 0 : index
    %c0_62 = arith.constant 0 : index
    %266 = vector.load %arg6[%265, %c0_61, %c0_62] : memref<8x2x32xf32, #tpu.memory_space<vmem>>, vector<1x2x32xf32>
    %267 = vector.shape_cast %266 : vector<1x2x32xf32> to vector<2x32xf32>
    %268 = vector.shape_cast %264 : vector<2x32xf32> to vector<1x2x32xf32>
    tpu.vector_store %arg6[%265, %c0_61, %c0_62], %268 {strides = array<i32>} : memref<8x2x32xf32, #tpu.memory_space<vmem>>, vector<1x2x32xf32>,
    %c6_i32 = arith.constant 6 : i32
    %269 = arith.index_cast %c6_i32 : i32 to index
    %c0_63 = arith.constant 0 : index
    %c0_64 = arith.constant 0 : index
    %270 = vector.load %arg0[%269, %c0_63, %c0_64] : memref<8x2x128xf32, #tpu.memory_space<vmem>>, vector<1x2x128xf32>
    %271 = vector.shape_cast %270 : vector<1x2x128xf32> to vector<2x128xf32>
    %cst_65 = arith.constant dense<0.000000e+00> : vector<2x128xf32>
    %272 = tpu.matmul %245, %0, %cst_65 {dimension_numbers = #tpu.dot_dimension_numbers<[1], [0], [0], [1], [0, 0, 1, 1], [], []>} : vector<2x32xf32>, vector<32x128xf32>, vector<2x128xf32> -> vector<2x128xf32>
    %273 = arith.addf %271, %272 : vector<2x128xf32>
    %274 = arith.negf %273 : vector<2x128xf32>
    %275 = math.exp %274 : vector<2x128xf32>
    %cst_66 = arith.constant 1.000000e+00 : f32
    %276 = vector.broadcast %cst_66 : f32 to vector<2x128xf32>
    %277 = arith.addf %276, %275 : vector<2x128xf32>
    %278 = arith.divf %276, %277 : vector<2x128xf32>
    %279 = math.tanh %273 : vector<2x128xf32>
    %280 = vector.extract_strided_slice %278 {offsets = [0, 0], sizes = [2, 32], strides = [1, 1]} : vector<2x128xf32> to vector<2x32xf32>
    %281 = vector.extract_strided_slice %278 {offsets = [0, 32], sizes = [2, 32], strides = [1, 1]} : vector<2x128xf32> to vector<2x32xf32>
    %282 = vector.extract_strided_slice %279 {offsets = [0, 64], sizes = [2, 32], strides = [1, 1]} : vector<2x128xf32> to vector<2x32xf32>
    %283 = vector.extract_strided_slice %278 {offsets = [0, 96], sizes = [2, 32], strides = [1, 1]} : vector<2x128xf32> to vector<2x32xf32>
    %284 = arith.mulf %281, %243 : vector<2x32xf32>
    %285 = arith.mulf %280, %282 : vector<2x32xf32>
    %286 = arith.addf %284, %285 : vector<2x32xf32>
    %287 = math.tanh %286 : vector<2x32xf32>
    %288 = arith.mulf %283, %287 : vector<2x32xf32>
    %289 = tpu.concatenate %288, %264 in 1 : vector<2x32xf32>, vector<2x32xf32> -> vector<2x64xf32>
    %cst_67 = arith.constant dense<0.000000e+00> : vector<2x128xf32>
    %290 = tpu.matmul %289, %1, %cst_67 {dimension_numbers = #tpu.dot_dimension_numbers<[1], [0], [0], [1], [0, 0, 1, 1], [], []>} : vector<2x64xf32>, vector<64x128xf32>, vector<2x128xf32> -> vector<2x128xf32>
    %291 = vector.broadcast %2 : vector<1x128xf32> to vector<2x128xf32>
    %292 = arith.addf %290, %291 : vector<2x128xf32>
    %293 = arith.negf %292 : vector<2x128xf32>
    %294 = math.exp %293 : vector<2x128xf32>
    %cst_68 = arith.constant 1.000000e+00 : f32
    %295 = vector.broadcast %cst_68 : f32 to vector<2x128xf32>
    %296 = arith.addf %295, %294 : vector<2x128xf32>
    %297 = arith.divf %295, %296 : vector<2x128xf32>
    %298 = math.tanh %292 : vector<2x128xf32>
    %299 = vector.extract_strided_slice %297 {offsets = [0, 0], sizes = [2, 32], strides = [1, 1]} : vector<2x128xf32> to vector<2x32xf32>
    %300 = vector.extract_strided_slice %297 {offsets = [0, 32], sizes = [2, 32], strides = [1, 1]} : vector<2x128xf32> to vector<2x32xf32>
    %301 = vector.extract_strided_slice %298 {offsets = [0, 64], sizes = [2, 32], strides = [1, 1]} : vector<2x128xf32> to vector<2x32xf32>
    %302 = vector.extract_strided_slice %297 {offsets = [0, 96], sizes = [2, 32], strides = [1, 1]} : vector<2x128xf32> to vector<2x32xf32>
    %303 = arith.mulf %300, %262 : vector<2x32xf32>
    %304 = arith.mulf %299, %301 : vector<2x32xf32>
    %305 = arith.addf %303, %304 : vector<2x32xf32>
    %306 = math.tanh %305 : vector<2x32xf32>
    %307 = arith.mulf %302, %306 : vector<2x32xf32>
    %308 = arith.index_cast %c6_i32 : i32 to index
    %c0_69 = arith.constant 0 : index
    %c0_70 = arith.constant 0 : index
    %309 = vector.load %arg6[%308, %c0_69, %c0_70] : memref<8x2x32xf32, #tpu.memory_space<vmem>>, vector<1x2x32xf32>
    %310 = vector.shape_cast %309 : vector<1x2x32xf32> to vector<2x32xf32>
    %311 = vector.shape_cast %307 : vector<2x32xf32> to vector<1x2x32xf32>
    tpu.vector_store %arg6[%308, %c0_69, %c0_70], %311 {strides = array<i32>} : memref<8x2x32xf32, #tpu.memory_space<vmem>>, vector<1x2x32xf32>,
    %c7_i32 = arith.constant 7 : i32
    %312 = arith.index_cast %c7_i32 : i32 to index
    %c0_71 = arith.constant 0 : index
    %c0_72 = arith.constant 0 : index
    %313 = vector.load %arg0[%312, %c0_71, %c0_72] : memref<8x2x128xf32, #tpu.memory_space<vmem>>, vector<1x2x128xf32>
    %314 = vector.shape_cast %313 : vector<1x2x128xf32> to vector<2x128xf32>
    %cst_73 = arith.constant dense<0.000000e+00> : vector<2x128xf32>
    %315 = tpu.matmul %288, %0, %cst_73 {dimension_numbers = #tpu.dot_dimension_numbers<[1], [0], [0], [1], [0, 0, 1, 1], [], []>} : vector<2x32xf32>, vector<32x128xf32>, vector<2x128xf32> -> vector<2x128xf32>
    %316 = arith.addf %314, %315 : vector<2x128xf32>
    %317 = arith.negf %316 : vector<2x128xf32>
    %318 = math.exp %317 : vector<2x128xf32>
    %cst_74 = arith.constant 1.000000e+00 : f32
    %319 = vector.broadcast %cst_74 : f32 to vector<2x128xf32>
    %320 = arith.addf %319, %318 : vector<2x128xf32>
    %321 = arith.divf %319, %320 : vector<2x128xf32>
    %322 = math.tanh %316 : vector<2x128xf32>
    %323 = vector.extract_strided_slice %321 {offsets = [0, 0], sizes = [2, 32], strides = [1, 1]} : vector<2x128xf32> to vector<2x32xf32>
    %324 = vector.extract_strided_slice %321 {offsets = [0, 32], sizes = [2, 32], strides = [1, 1]} : vector<2x128xf32> to vector<2x32xf32>
    %325 = vector.extract_strided_slice %322 {offsets = [0, 64], sizes = [2, 32], strides = [1, 1]} : vector<2x128xf32> to vector<2x32xf32>
    %326 = vector.extract_strided_slice %321 {offsets = [0, 96], sizes = [2, 32], strides = [1, 1]} : vector<2x128xf32> to vector<2x32xf32>
    %327 = arith.mulf %324, %286 : vector<2x32xf32>
    %328 = arith.mulf %323, %325 : vector<2x32xf32>
    %329 = arith.addf %327, %328 : vector<2x32xf32>
    %330 = math.tanh %329 : vector<2x32xf32>
    %331 = arith.mulf %326, %330 : vector<2x32xf32>
    %332 = tpu.concatenate %331, %307 in 1 : vector<2x32xf32>, vector<2x32xf32> -> vector<2x64xf32>
    %cst_75 = arith.constant dense<0.000000e+00> : vector<2x128xf32>
    %333 = tpu.matmul %332, %1, %cst_75 {dimension_numbers = #tpu.dot_dimension_numbers<[1], [0], [0], [1], [0, 0, 1, 1], [], []>} : vector<2x64xf32>, vector<64x128xf32>, vector<2x128xf32> -> vector<2x128xf32>
    %334 = vector.broadcast %2 : vector<1x128xf32> to vector<2x128xf32>
    %335 = arith.addf %333, %334 : vector<2x128xf32>
    %336 = arith.negf %335 : vector<2x128xf32>
    %337 = math.exp %336 : vector<2x128xf32>
    %cst_76 = arith.constant 1.000000e+00 : f32
    %338 = vector.broadcast %cst_76 : f32 to vector<2x128xf32>
    %339 = arith.addf %338, %337 : vector<2x128xf32>
    %340 = arith.divf %338, %339 : vector<2x128xf32>
    %341 = math.tanh %335 : vector<2x128xf32>
    %342 = vector.extract_strided_slice %340 {offsets = [0, 0], sizes = [2, 32], strides = [1, 1]} : vector<2x128xf32> to vector<2x32xf32>
    %343 = vector.extract_strided_slice %340 {offsets = [0, 32], sizes = [2, 32], strides = [1, 1]} : vector<2x128xf32> to vector<2x32xf32>
    %344 = vector.extract_strided_slice %341 {offsets = [0, 64], sizes = [2, 32], strides = [1, 1]} : vector<2x128xf32> to vector<2x32xf32>
    %345 = vector.extract_strided_slice %340 {offsets = [0, 96], sizes = [2, 32], strides = [1, 1]} : vector<2x128xf32> to vector<2x32xf32>
    %346 = arith.mulf %343, %305 : vector<2x32xf32>
    %347 = arith.mulf %342, %344 : vector<2x32xf32>
    %348 = arith.addf %346, %347 : vector<2x32xf32>
    %349 = math.tanh %348 : vector<2x32xf32>
    %350 = arith.mulf %345, %349 : vector<2x32xf32>
    %351 = arith.index_cast %c7_i32 : i32 to index
    %c0_77 = arith.constant 0 : index
    %c0_78 = arith.constant 0 : index
    %352 = vector.load %arg6[%351, %c0_77, %c0_78] : memref<8x2x32xf32, #tpu.memory_space<vmem>>, vector<1x2x32xf32>
    %353 = vector.shape_cast %352 : vector<1x2x32xf32> to vector<2x32xf32>
    %354 = vector.shape_cast %350 : vector<2x32xf32> to vector<1x2x32xf32>
    tpu.vector_store %arg6[%351, %c0_77, %c0_78], %354 {strides = array<i32>} : memref<8x2x32xf32, #tpu.memory_space<vmem>>, vector<1x2x32xf32>,
    %c8_i32 = arith.constant 8 : i32
    %c0_79 = arith.constant 0 : index
    %c0_80 = arith.constant 0 : index
    %c0_81 = arith.constant 0 : index
    %355 = vector.load %arg7[%c0_79, %c0_80, %c0_81] : memref<2x2x32xf32, #tpu.memory_space<vmem>>, vector<1x2x32xf32>
    %356 = vector.shape_cast %355 : vector<1x2x32xf32> to vector<2x32xf32>
    %357 = vector.shape_cast %331 : vector<2x32xf32> to vector<1x2x32xf32>
    tpu.vector_store %arg7[%c0_79, %c0_80, %c0_81], %357 {strides = array<i32>} : memref<2x2x32xf32, #tpu.memory_space<vmem>>, vector<1x2x32xf32>,
    %c0_82 = arith.constant 0 : index
    %c0_83 = arith.constant 0 : index
    %c0_84 = arith.constant 0 : index
    %358 = vector.load %arg8[%c0_82, %c0_83, %c0_84] : memref<2x2x32xf32, #tpu.memory_space<vmem>>, vector<1x2x32xf32>
    %359 = vector.shape_cast %358 : vector<1x2x32xf32> to vector<2x32xf32>
    %360 = vector.shape_cast %329 : vector<2x32xf32> to vector<1x2x32xf32>
    tpu.vector_store %arg8[%c0_82, %c0_83, %c0_84], %360 {strides = array<i32>} : memref<2x2x32xf32, #tpu.memory_space<vmem>>, vector<1x2x32xf32>,
    %c1_85 = arith.constant 1 : index
    %c0_86 = arith.constant 0 : index
    %c0_87 = arith.constant 0 : index
    %361 = vector.load %arg7[%c1_85, %c0_86, %c0_87] : memref<2x2x32xf32, #tpu.memory_space<vmem>>, vector<1x2x32xf32>
    %362 = vector.shape_cast %361 : vector<1x2x32xf32> to vector<2x32xf32>
    %363 = vector.shape_cast %350 : vector<2x32xf32> to vector<1x2x32xf32>
    tpu.vector_store %arg7[%c1_85, %c0_86, %c0_87], %363 {strides = array<i32>} : memref<2x2x32xf32, #tpu.memory_space<vmem>>, vector<1x2x32xf32>,
    %c1_88 = arith.constant 1 : index
    %c0_89 = arith.constant 0 : index
    %c0_90 = arith.constant 0 : index
    %364 = vector.load %arg8[%c1_88, %c0_89, %c0_90] : memref<2x2x32xf32, #tpu.memory_space<vmem>>, vector<1x2x32xf32>
    %365 = vector.shape_cast %364 : vector<1x2x32xf32> to vector<2x32xf32>
    %366 = vector.shape_cast %348 : vector<2x32xf32> to vector<1x2x32xf32>
    tpu.vector_store %arg8[%c1_88, %c0_89, %c0_90], %366 {strides = array<i32>} : memref<2x2x32xf32, #tpu.memory_space<vmem>>, vector<1x2x32xf32>,
    return
  }
}

</mosaic_0001>

<bundles_post_ra>
// kernel: tpu_custom_call.1
= control target key start
LH: loop header
LB: loop body
LE: loop exit
PB: predicated region body
PF: predicated region fallthrough
CT: control target
= control target key end

     0   :  { %14 = vsyncpa [#allocation3], 0  ;;  %s2097_s0 = inlined_call_operand.hbm [shape: f32[8,2,128], index: 0, kind: input, shape index: {}]   ;;  %s2098_s1 = inlined_call_operand.hbm [shape: f32[32,128], index: 1, kind: input, shape index: {}]   ;;  %s2099_s2 = inlined_call_operand.hbm [shape: f32[64,128], index: 2, kind: input, shape index: {}]   ;;  %s2100_s3 = inlined_call_operand.hbm [shape: f32[1,128], index: 3, kind: input, shape index: {}]   ;;  %s2101_s4 = inlined_call_operand.hbm [shape: f32[2,2,32], index: 4, kind: input, shape index: {}]   ;;  %s2102_s5 = inlined_call_operand.vmem [shape: f32[2,2,32], index: 5, kind: input, shape index: {}]   ;;  %s2103_s6 = inlined_call_operand.hbm [shape: f32[8,2,32], index: 6, kind: output, shape index: {0}]   ;;  %s2104_s7 = inlined_call_operand.hbm [shape: f32[2,2,32], index: 7, kind: output, shape index: {1}]   ;;  %s2105_s8 = inlined_call_operand.hbm [shape: f32[2,2,32], index: 8, kind: output, shape index: {2}]  }
   0x1   :  { %15 = vsyncpa [#allocation6], 0 }
   0x2   :  { %16 = vsyncpa [#allocation9], 0 }
   0x3   :  { %17 = vsyncpa [#allocation4], 0  ;;  %s36_s29 = sshll.u32 %s2098_s1, 4  ;;  %s37_s29 = int_to_ptr.hbm [resolvable:$true] %s36_s29 }
   0x4   :  { %18 = vsyncpa [#allocation13], 0  ;;  %s1674_s30 = smov [#allocation5]   ;;  %s63_s12 = sshll.u32 %s2100_s3, 4  ;;  %s64_s12 = int_to_ptr.hbm [resolvable:$true] %s63_s12 }
   0x5   :  { %s38_s9 = sshll.u32 %s1674_s30, 4  ;;  %s1675_s13 = smov 128   ;;  %s39_s9 = int_to_ptr.vmem [resolvable:$true] %s38_s9 }
   0x6   :  { %s1676_s14 = smov 8   ;;  %s1677_s15 = smov [#allocation8]  }
   0x7   :  { %44 = dma.hbm_to_vmem [thread:$0]  %s37_s29, 512, %s39_s9, [#allocation6], %s1675_s13, %s1675_s13, %s1676_s14  }
   0x8   :  { %s65_s16 = sshll.u32 %s1677_s15, 4  ;;  %s23_s19 = sshll.u32 %s2097_s0, 4  ;;  %s66_s16 = int_to_ptr.vmem [resolvable:$true] %s65_s16  ;;  %s24_s19 = int_to_ptr.hbm [resolvable:$true] %s23_s19 }
   0x9   :  { %68 = dma.hbm_to_vmem [thread:$0]  %s64_s12, 16, %s66_s16, [#allocation9]  }
   0xa   :  { %s1678_s1 = smov [#allocation2]   ;;  %s49_s3 = sshll.u32 %s2099_s2, 4  ;;  %s50_s3 = int_to_ptr.hbm [resolvable:$true] %s49_s3 }
   0xb   :  { %s25_s20 = sshll.u32 %s1678_s1, 4  ;;  %s1679_s23 = smov 32   ;;  %s26_s20 = int_to_ptr.vmem [resolvable:$true] %s25_s20 }
   0xc   :  { %s1680_s24 = smov 2   ;;  %s1681_s25 = smov [#allocation7]  }
   0xd   :  { %31 = dma.hbm_to_vmem [thread:$0]  %s24_s19, 256, %s26_s20, [#allocation3], %s1679_s23, %s1679_s23, %s1680_s24  }
   0xe   :  { %s51_s26 = sshll.u32 %s1681_s25, 4  ;;  %s73_s28 = sshll.u32 %s2101_s4, 4  ;;  %s52_s26 = int_to_ptr.vmem [resolvable:$true] %s51_s26  ;;  %s74_s28 = int_to_ptr.hbm [resolvable:$true] %s73_s28 }
   0xf   :  { %57 = dma.hbm_to_vmem [thread:$0]  %s50_s3, 1024, %s52_s26, [#allocation6], %s1675_s13, %s1675_s13, %s1676_s14  }
  0x10   :  { %s1682_s29 = smov [#allocation10]  }
  0x11   :  { %s75_s30 = sshll.u32 %s1682_s29, 4  ;;  %s76_s30 = int_to_ptr.vmem [resolvable:$true] %s75_s30 }
  0x12   :  { %81 = dma.hbm_to_vmem [thread:$0]  %s74_s28, 64, %s76_s30, [#allocation9], %s1679_s23, %s1679_s23, %s1680_s24  }
  0x13   :  { %1664 = dma.done.wait [#allocation3], 256  }
  0x14   :  { %1665 = vsyncadd [#allocation3], 4294967040 }
  0x15   :  { %1666 = dma.done.wait [#allocation6], 1536  }
  0x16   :  { %1667 = vsyncadd [#allocation6], 4294965760 }
  0x17   :  { %1668 = dma.done.wait [#allocation9], 80  }
  0x18   :  { %1669 = vsyncadd [#allocation9], 4294967216  ;;  %v1754_v0 = vld [vmem:[#allocation5 + $0x18] sm:$0xff]  ;;  %v1756_v1 = vld [vmem:[#allocation5 + $0x10] sm:$0xff]  ;;  %vm124_vm0 = vcmask 261120   ;;  %s1683_s2 = smov 64  }
  0x19   :  { %140 = vmatpush.msra.mxu0 %v1754_v0  ;;  %289 = vmatpush.msra.mxu2 %v1754_v0  ;;  %v1760_v2 = vld [vmem:[#allocation5 + $0x8] sm:$0xff]  ;;  %v1764_v3 = vld [vmem:[#allocation5] sm:$0xff]  ;;  %v123_v5 = vld [vmem:[#allocation2] sm:$0x3]  ;;  %vm202_vm5 = vcmask 523264   ;;  %s1685_s12 = smov [#allocation11]  }
  0x1a   :  { %v117_v4 = vld [vmem:[#allocation10] sm:$0x3]  ;;  %v120_v9 = vld [vmem:[%s2102_s5] sm:$0x3]  ;;  %v1789_v30 = vld [vmem:[#allocation7 + $0x38] sm:$0xff]  ;;  %s1243_s13 = sshll.u32 %s1685_s12, 4  ;;  %s1244_s13 = int_to_ptr.vmem [resolvable:$true] %s1243_s13 }
  0x1b   :  { %141 = vmatpush.msra.mxu0 %v1756_v1  ;;  %290 = vmatpush.msra.mxu2 %v1756_v1  ;;  %v1791_v31 = vld [vmem:[#allocation7 + $0x30] sm:$0xff]  ;;  %v1795_v32 = vld [vmem:[#allocation7 + $0x28] sm:$0xff]  ;;  %v119_v35 = vld [vmem:[#allocation10 + $0x2] sm:$0x3]  ;;  %s1245_s16 = sshll.u32 %s2103_s6, 4  ;;  %s1686_s17 = smov [#allocation12]   ;;  %s1246_s16 = int_to_ptr.hbm [resolvable:$true] %s1245_s16 }
  0x1c   :  { %214 = vmatpush.msra.mxu1 %v1789_v30  ;;  %354 = vmatpush.msra.mxu3 %v1789_v30  ;;  %v1806_v36 = vld [vmem:[#allocation7 + $0x20] sm:$0xff]  ;;  %v1809_v37 = vld [vmem:[#allocation7 + $0x18] sm:$0xff]  ;;  %v1812_v38 = vld [vmem:[#allocation7 + $0x10] sm:$0xff]  ;;  %s1256_s18 = sshll.u32 %s1686_s17, 4  ;;  %s1258_s20 = sshll.u32 %s2104_s7, 4  ;;  %s1257_s18 = int_to_ptr.vmem [resolvable:$true] %s1256_s18  ;;  %s1259_s20 = int_to_ptr.hbm [resolvable:$true] %s1258_s20 }
  0x1d   :  { %142 = vmatpush.msra.mxu0 %v1760_v2  ;;  %291 = vmatpush.msra.mxu2 %v1760_v2  ;;  %v1817_v39 = vld [vmem:[#allocation7 + $0x8] sm:$0xff]  ;;  %v1825_v40 = vld [vmem:[#allocation7] sm:$0xff]  ;;  %v1295_v41 = vld [vmem:[%s2102_s5 + $0x2] sm:$0x3]  ;;  %s1684_s5 = smov 96   ;;  %s1687_s6 = smov [#allocation14]  }
  0x1e   :  { %215 = vmatpush.msra.mxu1 %v1791_v31  ;;  %355 = vmatpush.msra.mxu3 %v1791_v31  ;;  %v274_v45 = vld [vmem:[#allocation2 + $0x2] sm:$0x3]  ;;  %v1862_v47 = vld [vmem:[#allocation8] ss:$0 sm:$0xff]  ;;  %s1269_s21 = sshll.u32 %s1687_s6, 4  ;;  %s1271_s3 = sshll.u32 %s2105_s8, 4  ;;  %s1270_s21 = int_to_ptr.vmem [resolvable:$true] %s1269_s21  ;;  %s1272_s3 = int_to_ptr.hbm [resolvable:$true] %s1271_s3 }
  0x1f   :  { %143 = vmatpush.msra.mxu0 %v1764_v3  ;;  %292 = vmatpush.msra.mxu2 %v1764_v3 }
  0x20   :  { %1296 = vmatmul.msk.f32.vlgmr.msra.gmra.mxu0 %vm124_vm0, %v117_v4  ;;  %216 = vmatpush.msra.mxu1 %v1795_v32 }
  0x21   :  { %425 = vmatpush.msrb.mxu0 %v1754_v0  ;;  %490 = vmatpush.msrb.mxu2 %v1789_v30 }
  0x22   :  { %356 = vmatpush.msra.mxu3 %v1795_v32  ;;  %217 = vmatpush.msra.mxu1 %v1806_v36 }
  0x23   :  { %426 = vmatpush.msrb.mxu0 %v1756_v1  ;;  %491 = vmatpush.msrb.mxu2 %v1791_v31 }
  0x24   :  { %357 = vmatpush.msra.mxu3 %v1806_v36  ;;  %218 = vmatpush.msra.mxu1 %v1809_v37 }
  0x25   :  { %427 = vmatpush.msrb.mxu0 %v1760_v2  ;;  %492 = vmatpush.msrb.mxu2 %v1795_v32 }
  0x26   :  { %358 = vmatpush.msra.mxu3 %v1809_v37  ;;  %219 = vmatpush.msra.mxu1 %v1812_v38 }
  0x27   :  { %428 = vmatpush.msrb.mxu0 %v1764_v3  ;;  %493 = vmatpush.msrb.mxu2 %v1806_v36 }
  0x28   :  { %359 = vmatpush.msra.mxu3 %v1812_v38  ;;  %220 = vmatpush.msra.mxu1 %v1817_v39 }
  0x29   :  { %561 = vmatpush.msra.mxu0 %v1754_v0  ;;  %494 = vmatpush.msrb.mxu2 %v1809_v37 }
  0x2a   :  { %360 = vmatpush.msra.mxu3 %v1817_v39  ;;  %221 = vmatpush.msra.mxu1 %v1825_v40 }
  0x2b   :  { %562 = vmatpush.msra.mxu0 %v1756_v1  ;;  %495 = vmatpush.msrb.mxu2 %v1812_v38 }
  0x2c   :  { %361 = vmatpush.msra.mxu3 %v1825_v40  ;;  %626 = vmatpush.msrb.mxu1 %v1789_v30 }
  0x2d   :  { %563 = vmatpush.msra.mxu0 %v1760_v2  ;;  %496 = vmatpush.msrb.mxu2 %v1817_v39 }
  0x2e   :  { %697 = vmatpush.msrb.mxu3 %v1754_v0  ;;  %627 = vmatpush.msrb.mxu1 %v1791_v31 }
  0x2f   :  { %564 = vmatpush.msra.mxu0 %v1764_v3  ;;  %497 = vmatpush.msrb.mxu2 %v1825_v40 }
  0x30   :  { %698 = vmatpush.msrb.mxu3 %v1756_v1  ;;  %628 = vmatpush.msrb.mxu1 %v1795_v32 }
  0x32   :  { %699 = vmatpush.msrb.mxu3 %v1760_v2  ;;  %629 = vmatpush.msrb.mxu1 %v1806_v36 }
  0x34   :  { %700 = vmatpush.msrb.mxu3 %v1764_v3  ;;  %630 = vmatpush.msrb.mxu1 %v1809_v37 }
  0x36   :  { %631 = vmatpush.msrb.mxu1 %v1812_v38 }
  0x38   :  { %632 = vmatpush.msrb.mxu1 %v1817_v39 }
  0x3a   :  { %633 = vmatpush.msrb.mxu1 %v1825_v40 }
  0x9d   :  { %v145_v6 = vpop.f32.mrf.mxu0 }
  0x9e   :  { %v148_v7 = vadd.f32 %v145_v6, %v123_v5 }
  0xa0   :  { %1343 = vtanh.f32 %v148_v7  ;;  %v1297_v10 = vmul.f32 -1.442695, %v148_v7 }
  0xa2   :  { %1345 = vpow2.f32 %v1297_v10 }
  0xa6   :  { %v1344_v8 = vpop.eup %1343 }
  0xa7   :  { %175 = vrot.lane.b32.xlu0 %v1344_v8, %s1683_s2 }
  0xa8   :  { %v1346_v11 = vpop.eup %1345 }
  0xa9   :  { %v152_v12 = vadd.f32 1.0, %v1346_v11 }
  0xab   :  { %1347 = vrcp.f32 %v152_v12  ;;  %v164_v18 = vand.u32 2147483648, %v152_v12  ;;  %vm158_vm2 = vweird.f32 %v152_v12  ;;  %v162_v19 = vand.u32 2147483647, %v152_v12 }
  0xad   :  { %v165_v21 = vor.u32 1.1754944e-38, %v164_v18  ;;  %vm163_vm4 = vcmp.eq.f32.partialorder %v162_v19, 8.507059e+37 }
  0xaf   :  { %170 = vrot.lane.b32.xlu0 %v120_v9, %s1679_s23 }
  0xb1   :  { %v1348_v13 = vpop.eup %1347 }
  0xb2   :  { %v154_v14 = vmul.f32 %v1348_v13, %v152_v12  ;;  %vm159_vm1 = vweird.f32 %v1348_v13 }
  0xb3   :  { %vm160_vm3 = vmor %vm158_vm2, %vm159_vm1 }
  0xb4   :  { %v155_v15 = vsub.f32 1.0, %v154_v14 }
  0xb6   :  { %v156_v16 = vmul.f32 %v1348_v13, %v155_v15 }
  0xb8   :  { %v157_v17 = vadd.f32 %v1348_v13, %v156_v16 }
  0xba   :  { %v161_v20 = vsel %vm160_vm3, %v1348_v13, %v157_v17 }
  0xbb   :  { %v166_v23 = vsel %vm163_vm4, %v165_v21, %v161_v20 }
 0x119   :  { %v176_v22 = vpop.permute.xlu0 %175 }
 0x11a   :  { %v178_v24 = vmul.f32 %v176_v22, %v166_v23 }
 0x11c   :  { %180 = vrot.lane.b32.xlu1 %v178_v24, %s1679_s23 }
 0x121   :  { %v171_v25 = vpop.permute.xlu0 %170 }
 0x122   :  { %v173_v26 = vmul.f32 %v171_v25, %v166_v23 }
 0x18e   :  { %v181_v27 = vpop.permute.xlu1 %180 }
 0x18f   :  { %v1785_v28 = vadd.f32 %v181_v27, %v173_v26 }
 0x191   :  { %1349 = vtanh.f32 %v1785_v28 }
 0x197   :  { %v1350_v29 = vpop.eup %1349 }
 0x198   :  { %186 = vrot.lane.b32.xlu1 %v1350_v29, %s1683_s2 }
 0x20a   :  { %v187_v33 = vpop.permute.xlu1 %186 }
 0x20b   :  { %v189_v34 = vmul.f32 %v187_v33, %v166_v23 }
 0x20d   :  { %191 = vrot.lane.b32.xlu2 %v189_v34, %s1679_s23 }
 0x215   :  { %195 = vrot.lane.b32.xlu2 %v119_v35, %s1679_s23 }
 0x21d   :  { %247 = vrot.lane.b32.xlu2 %v1295_v41, %s1679_s23 }
 0x267   :  { %v192_v42 = vpop.permute.xlu2 %191 }
 0x268   :  { %1300 = vmatmul.msk.f32.vlgmr.msra.gmra.mxu2 %vm124_vm0, %v192_v42 }
 0x269   :  { %833 = vmatpush.msra.mxu2 %v1754_v0 }
 0x26b   :  { %834 = vmatpush.msra.mxu2 %v1756_v1 }
 0x26d   :  { %835 = vmatpush.msra.mxu2 %v1760_v2 }
 0x26f   :  { %v196_v43 = vpop.permute.xlu2 %195  ;;  %836 = vmatpush.msra.mxu2 %v1764_v3 }
 0x270   :  { %v198_v44 = vsel %vm124_vm0, %v192_v42, %v196_v43 }
 0x271   :  { %1298 = vmatmul.msk.f32.vlgmr.msra.gmra.mxu1 %vm202_vm5, %v198_v44 }
 0x272   :  { %1170 = vmatpush.msra.mxu1 %v1789_v30 }
 0x274   :  { %1171 = vmatpush.msra.mxu1 %v1791_v31 }
 0x276   :  { %1172 = vmatpush.msra.mxu1 %v1795_v32 }
 0x277   :  { %v248_v23 = vpop.permute.xlu2 %247 }
 0x278   :  { %1173 = vmatpush.msra.mxu1 %v1806_v36 }
 0x27a   :  { %1174 = vmatpush.msra.mxu1 %v1809_v37 }
 0x27c   :  { %1175 = vmatpush.msra.mxu1 %v1812_v38 }
 0x27e   :  { %1176 = vmatpush.msra.mxu1 %v1817_v39 }
 0x280   :  { %1177 = vmatpush.msra.mxu1 %v1825_v40 }
 0x2eb   :  { %v294_v46 = vpop.f32.mrf.mxu2 }
 0x2ec   :  { %v297_v48 = vadd.f32 %v294_v46, %v274_v45 }
 0x2ee   :  { %1351 = vtanh.f32 %v297_v48  ;;  %v223_v49 = vpop.f32.mrf.mxu1  ;;  %v1301_v53 = vmul.f32 -1.442695, %v297_v48  ;;  %v410_v48 = vld [vmem:[#allocation2 + $0x4] sm:$0x3] }
 0x2ef   :  { %v224_v50 = vadd.f32 %v1862_v47, %v223_v49 }
 0x2f1   :  { %1353 = vtanh.f32 %v224_v50  ;;  %v1299_v54 = vmul.f32 -1.442695, %v224_v50 }
 0x2f2   :  { %1355 = vpow2.f32 %v1301_v53 }
 0x2f3   :  { %1357 = vpow2.f32 %v1299_v54 }
 0x2f4   :  { %v1352_v51 = vpop.eup %1351 }
 0x2f5   :  { %320 = vrot.lane.b32.xlu1 %v1352_v51, %s1683_s2 }
 0x2f7   :  { %v1354_v52 = vpop.eup %1353 }
 0x2f8   :  { %252 = vrot.lane.b32.xlu0 %v1354_v52, %s1683_s2  ;;  %v1356_v55 = vpop.eup %1355 }
 0x2f9   :  { %v1358_v56 = vpop.eup %1357  ;;  %v301_v57 = vadd.f32 1.0, %v1356_v55 }
 0x2fa   :  { %v229_v58 = vadd.f32 1.0, %v1358_v56 }
 0x2fb   :  { %1359 = vrcp.f32 %v301_v57  ;;  %v313_v8 = vand.u32 2147483648, %v301_v57  ;;  %vm307_vm7 = vweird.f32 %v301_v57  ;;  %v311_v9 = vand.u32 2147483647, %v301_v57 }
 0x2fc   :  { %1361 = vrcp.f32 %v229_v58  ;;  %v241_v11 = vand.u32 2147483648, %v229_v58  ;;  %vm235_vm10 = vweird.f32 %v229_v58  ;;  %v239_v13 = vand.u32 2147483647, %v229_v58 }
 0x2fd   :  { %v314_v14 = vor.u32 1.1754944e-38, %v313_v8  ;;  %vm312_vm12 = vcmp.eq.f32.partialorder %v311_v9, 8.507059e+37 }
 0x2fe   :  { %v242_v18 = vor.u32 1.1754944e-38, %v241_v11  ;;  %vm240_vm13 = vcmp.eq.f32.partialorder %v239_v13, 8.507059e+37 }
 0x301   :  { %v1360_v59 = vpop.eup %1359 }
 0x302   :  { %v1362_v60 = vpop.eup %1361  ;;  %v303_v61 = vmul.f32 %v1360_v59, %v301_v57  ;;  %vm308_vm6 = vweird.f32 %v1360_v59 }
 0x303   :  { %v231_v62 = vmul.f32 %v1362_v60, %v229_v58  ;;  %vm236_vm8 = vweird.f32 %v1362_v60  ;;  %vm309_vm9 = vmor %vm307_vm7, %vm308_vm6 }
 0x304   :  { %v304_v63 = vsub.f32 1.0, %v303_v61  ;;  %vm237_vm11 = vmor %vm235_vm10, %vm236_vm8 }
 0x305   :  { %v232_v4 = vsub.f32 1.0, %v231_v62 }
 0x306   :  { %v305_v5 = vmul.f32 %v1360_v59, %v304_v63 }
 0x307   :  { %v233_v6 = vmul.f32 %v1362_v60, %v232_v4 }
 0x308   :  { %v306_v7 = vadd.f32 %v1360_v59, %v305_v5 }
 0x309   :  { %v234_v10 = vadd.f32 %v1362_v60, %v233_v6 }
 0x30a   :  { %v310_v12 = vsel %vm309_vm9, %v1360_v59, %v306_v7 }
 0x30b   :  { %v238_v15 = vsel %vm237_vm11, %v1362_v60, %v234_v10  ;;  %v315_v17 = vsel %vm312_vm12, %v314_v14, %v310_v12 }
 0x30c   :  { %v243_v20 = vsel %vm240_vm13, %v242_v18, %v238_v15  ;;  %v318_v24 = vmul.f32 %v315_v17, %v1785_v28 }
 0x30d   :  { %v250_v27 = vmul.f32 %v248_v23, %v243_v20 }
 0x367   :  { %v321_v16 = vpop.permute.xlu1 %320 }
 0x368   :  { %v323_v19 = vmul.f32 %v321_v16, %v315_v17 }
 0x36a   :  { %325 = vrot.lane.b32.xlu1 %v323_v19, %s1679_s23  ;;  %v253_v21 = vpop.permute.xlu0 %252 }
 0x36b   :  { %v255_v22 = vmul.f32 %v253_v21, %v243_v20 }
 0x36d   :  { %257 = vrot.lane.b32.xlu0 %v255_v22, %s1679_s23 }
 0x3dc   :  { %v326_v25 = vpop.permute.xlu1 %325 }
 0x3dd   :  { %v1870_v26 = vadd.f32 %v326_v25, %v318_v24 }
 0x3df   :  { %1363 = vtanh.f32 %v1870_v26  ;;  %v258_v29 = vpop.permute.xlu0 %257 }
 0x3e0   :  { %v1873_v33 = vadd.f32 %v258_v29, %v250_v27 }
 0x3e2   :  { %1365 = vtanh.f32 %v1873_v33 }
 0x3e5   :  { %v1364_v34 = vpop.eup %1363 }
 0x3e6   :  { %331 = vrot.lane.b32.xlu0 %v1364_v34, %s1683_s2 }
 0x3e8   :  { %v1366_v35 = vpop.eup %1365 }
 0x3e9   :  { %263 = vrot.lane.b32.xlu2 %v1366_v35, %s1683_s2 }
 0x443   :  { %v264_v41 = vpop.permute.xlu2 %263 }
 0x444   :  { %v1878_v42 = vmul.f32 %v264_v41, %v243_v20 }
 0x446   :  { %339 = vrot.lane.b32.xlu2 %v1878_v42, %s1683_s2 }
 0x458   :  { %v332_v28 = vpop.permute.xlu0 %331 }
 0x459   :  { %v334_v43 = vmul.f32 %v332_v28, %v315_v17 }
 0x45b   :  { %336 = vrot.lane.b32.xlu1 %v334_v43, %s1679_s23 }
 0x4a0   :  { %v340_v44 = vpop.permute.xlu2 %339 }
 0x4cd   :  { %v337_v45 = vpop.permute.xlu1 %336 }
 0x4ce   :  { %1304 = vmatmul.msk.f32.vlgmr.msrb.gmra.mxu0 %vm124_vm0, %v337_v45  ;;  %v342_v46 = vsel %vm124_vm0, %v337_v45, %v340_v44 }
 0x4cf   :  { %1302 = vmatmul.msk.f32.vlgmr.msra.gmra.mxu3 %vm202_vm5, %v342_v46  ;;  %762 = vmatpush.msrb.mxu0 %v1789_v30 }
 0x4d0   :  { %898 = vmatpush.msra.mxu3 %v1789_v30 }
 0x4d1   :  { %763 = vmatpush.msrb.mxu0 %v1791_v31 }
 0x4d2   :  { %899 = vmatpush.msra.mxu3 %v1791_v31 }
 0x4d3   :  { %764 = vmatpush.msrb.mxu0 %v1795_v32 }
 0x4d4   :  { %900 = vmatpush.msra.mxu3 %v1795_v32 }
 0x4d5   :  { %765 = vmatpush.msrb.mxu0 %v1806_v36 }
 0x4d6   :  { %901 = vmatpush.msra.mxu3 %v1806_v36 }
 0x4d7   :  { %766 = vmatpush.msrb.mxu0 %v1809_v37 }
 0x4d8   :  { %902 = vmatpush.msra.mxu3 %v1809_v37 }
 0x4d9   :  { %767 = vmatpush.msrb.mxu0 %v1812_v38 }
 0x4da   :  { %903 = vmatpush.msra.mxu3 %v1812_v38 }
 0x4db   :  { %768 = vmatpush.msrb.mxu0 %v1817_v39 }
 0x4dc   :  { %904 = vmatpush.msra.mxu3 %v1817_v39 }
 0x4dd   :  { %769 = vmatpush.msrb.mxu0 %v1825_v40 }
 0x4de   :  { %905 = vmatpush.msra.mxu3 %v1825_v40 }
 0x54b   :  { %v430_v49 = vpop.f32.mrf.mxu0 }
 0x54c   :  { %v433_v50 = vadd.f32 %v430_v49, %v410_v48 }
 0x54e   :  { %1367 = vtanh.f32 %v433_v50  ;;  %v1305_v55 = vmul.f32 -1.442695, %v433_v50  ;;  %v546_v50 = vld [vmem:[#allocation2 + $0x6] sm:$0x3] }
 0x552   :  { %v363_v51 = vpop.f32.mrf.mxu3 }
 0x553   :  { %v364_v52 = vadd.f32 %v1862_v47, %v363_v51 }
 0x554   :  { %v1368_v53 = vpop.eup %1367 }
 0x555   :  { %1369 = vtanh.f32 %v364_v52  ;;  %456 = vrot.lane.b32.xlu0 %v1368_v53, %s1683_s2  ;;  %v1303_v56 = vmul.f32 -1.442695, %v364_v52 }
 0x556   :  { %1371 = vpow2.f32 %v1305_v55 }
 0x557   :  { %1373 = vpow2.f32 %v1303_v56 }
 0x55b   :  { %v1370_v54 = vpop.eup %1369 }
 0x55c   :  { %388 = vrot.lane.b32.xlu1 %v1370_v54, %s1683_s2  ;;  %v1372_v57 = vpop.eup %1371 }
 0x55d   :  { %v437_v58 = vadd.f32 1.0, %v1372_v57  ;;  %v1374_v59 = vpop.eup %1373 }
 0x55e   :  { %v369_v60 = vadd.f32 1.0, %v1374_v59 }
 0x55f   :  { %1375 = vrcp.f32 %v437_v58  ;;  %v449_v9 = vand.u32 2147483648, %v437_v58  ;;  %vm443_vm15 = vweird.f32 %v437_v58  ;;  %v447_v10 = vand.u32 2147483647, %v437_v58 }
 0x560   :  { %1377 = vrcp.f32 %v369_v60  ;;  %v381_v18 = vand.u32 2147483648, %v369_v60  ;;  %vm375_vm4 = vweird.f32 %v369_v60  ;;  %v379_v19 = vand.u32 2147483647, %v369_v60 }
 0x561   :  { %v450_v13 = vor.u32 1.1754944e-38, %v449_v9  ;;  %vm448_vm2 = vcmp.eq.f32.partialorder %v447_v10, 8.507059e+37 }
 0x562   :  { %v382_v21 = vor.u32 1.1754944e-38, %v381_v18  ;;  %vm380_vm7 = vcmp.eq.f32.partialorder %v379_v19, 8.507059e+37 }
 0x565   :  { %v1376_v61 = vpop.eup %1375 }
 0x566   :  { %v439_v62 = vmul.f32 %v1376_v61, %v437_v58  ;;  %v1378_v63 = vpop.eup %1377  ;;  %vm444_vm14 = vweird.f32 %v1376_v61 }
 0x567   :  { %v371_v5 = vmul.f32 %v1378_v63, %v369_v60  ;;  %vm445_vm1 = vmor %vm443_vm15, %vm444_vm14  ;;  %vm376_vm3 = vweird.f32 %v1378_v63 }
 0x568   :  { %v440_v4 = vsub.f32 1.0, %v439_v62  ;;  %vm377_vm6 = vmor %vm375_vm4, %vm376_vm3 }
 0x569   :  { %v372_v7 = vsub.f32 1.0, %v371_v5 }
 0x56a   :  { %v441_v6 = vmul.f32 %v1376_v61, %v440_v4 }
 0x56b   :  { %v373_v11 = vmul.f32 %v1378_v63, %v372_v7 }
 0x56c   :  { %v442_v8 = vadd.f32 %v1376_v61, %v441_v6 }
 0x56d   :  { %v374_v16 = vadd.f32 %v1378_v63, %v373_v11 }
 0x56e   :  { %v446_v12 = vsel %vm445_vm1, %v1376_v61, %v442_v8 }
 0x56f   :  { %v451_v15 = vsel %vm448_vm2, %v450_v13, %v446_v12  ;;  %v378_v20 = vsel %vm377_vm6, %v1378_v63, %v374_v16 }
 0x570   :  { %v383_v23 = vsel %vm380_vm7, %v382_v21, %v378_v20  ;;  %v454_v25 = vmul.f32 %v451_v15, %v1870_v26 }
 0x571   :  { %v386_v35 = vmul.f32 %v383_v23, %v1873_v33 }
 0x5c7   :  { %v457_v14 = vpop.permute.xlu0 %456 }
 0x5c8   :  { %v459_v17 = vmul.f32 %v457_v14, %v451_v15 }
 0x5ca   :  { %461 = vrot.lane.b32.xlu2 %v459_v17, %s1679_s23 }
 0x5ce   :  { %v389_v22 = vpop.permute.xlu1 %388 }
 0x5cf   :  { %v391_v24 = vmul.f32 %v389_v22, %v383_v23 }
 0x5d1   :  { %393 = vrot.lane.b32.xlu0 %v391_v24, %s1679_s23 }
 0x624   :  { %v462_v27 = vpop.permute.xlu2 %461 }
 0x625   :  { %v1908_v29 = vadd.f32 %v462_v27, %v454_v25 }
 0x627   :  { %1379 = vtanh.f32 %v1908_v29 }
 0x62d   :  { %v1380_v34 = vpop.eup %1379 }
 0x62e   :  { %467 = vrot.lane.b32.xlu1 %v1380_v34, %s1683_s2 }
 0x643   :  { %v394_v41 = vpop.permute.xlu0 %393 }
 0x644   :  { %v1913_v28 = vadd.f32 %v394_v41, %v386_v35 }
 0x646   :  { %1381 = vtanh.f32 %v1913_v28 }
 0x64c   :  { %v1382_v43 = vpop.eup %1381 }
 0x64d   :  { %399 = vrot.lane.b32.xlu2 %v1382_v43, %s1683_s2 }
 0x6a0   :  { %v468_v44 = vpop.permute.xlu1 %467 }
 0x6a1   :  { %v470_v26 = vmul.f32 %v468_v44, %v451_v15 }
 0x6a3   :  { %472 = vrot.lane.b32.xlu0 %v470_v26, %s1679_s23  ;;  %v682_v26 = vld [vmem:[#allocation2 + $0x8] sm:$0x3] }
 0x6a7   :  { %v400_v45 = vpop.permute.xlu2 %399 }
 0x6a8   :  { %v1918_v46 = vmul.f32 %v400_v45, %v383_v23 }
 0x6aa   :  { %475 = vrot.lane.b32.xlu1 %v1918_v46, %s1683_s2 }
 0x715   :  { %v473_v48 = vpop.permute.xlu0 %472 }
 0x716   :  { %1308 = vmatmul.msk.f32.vlgmr.msra.gmra.mxu0 %vm124_vm0, %v473_v48 }
 0x717   :  { %1105 = vmatpush.msra.mxu0 %v1754_v0 }
 0x719   :  { %1106 = vmatpush.msra.mxu0 %v1756_v1 }
 0x71b   :  { %1107 = vmatpush.msra.mxu0 %v1760_v2 }
 0x71c   :  { %v476_v33 = vpop.permute.xlu1 %475 }
 0x71d   :  { %v478_v49 = vsel %vm124_vm0, %v473_v48, %v476_v33  ;;  %1108 = vmatpush.msra.mxu0 %v1764_v3 }
 0x71e   :  { %1306 = vmatmul.msk.f32.vlgmr.msrb.gmra.mxu2 %vm202_vm5, %v478_v49 }
 0x71f   :  { %1034 = vmatpush.msrb.mxu2 %v1789_v30 }
 0x721   :  { %1035 = vmatpush.msrb.mxu2 %v1791_v31 }
 0x723   :  { %1036 = vmatpush.msrb.mxu2 %v1795_v32 }
 0x725   :  { %1037 = vmatpush.msrb.mxu2 %v1806_v36 }
 0x727   :  { %1038 = vmatpush.msrb.mxu2 %v1809_v37 }
 0x729   :  { %1039 = vmatpush.msrb.mxu2 %v1812_v38 }
 0x72b   :  { %1040 = vmatpush.msrb.mxu2 %v1817_v39 }
 0x72d   :  { %1041 = vmatpush.msrb.mxu2 %v1825_v40 }
 0x793   :  { %v566_v51 = vpop.f32.mrf.mxu0 }
 0x794   :  { %v569_v52 = vadd.f32 %v566_v51, %v546_v50 }
 0x796   :  { %1383 = vtanh.f32 %v569_v52  ;;  %v1309_v36 = vmul.f32 -1.442695, %v569_v52 }
 0x79c   :  { %v1384_v53 = vpop.eup %1383 }
 0x79d   :  { %592 = vrot.lane.b32.xlu2 %v1384_v53, %s1683_s2 }
 0x7a1   :  { %v499_v30 = vpop.f32.mrf.mxu2 }
 0x7a2   :  { %v500_v31 = vadd.f32 %v1862_v47, %v499_v30 }
 0x7a4   :  { %1385 = vtanh.f32 %v500_v31  ;;  %v1307_v56 = vmul.f32 -1.442695, %v500_v31 }
 0x7a5   :  { %1387 = vpow2.f32 %v1309_v36 }
 0x7aa   :  { %v1386_v32 = vpop.eup %1385 }
 0x7ab   :  { %524 = vrot.lane.b32.xlu0 %v1386_v32, %s1683_s2  ;;  %v1388_v37 = vpop.eup %1387 }
 0x7ac   :  { %v573_v38 = vadd.f32 1.0, %v1388_v37 }
 0x7ae   :  { %1389 = vrcp.f32 %v573_v38  ;;  %v585_v58 = vand.u32 2147483648, %v573_v38  ;;  %vm579_vm9 = vweird.f32 %v573_v38  ;;  %v583_v59 = vand.u32 2147483647, %v573_v38 }
 0x7af   :  { %1391 = vpow2.f32 %v1307_v56 }
 0x7b0   :  { %v586_v61 = vor.u32 1.1754944e-38, %v585_v58  ;;  %vm584_vm11 = vcmp.eq.f32.partialorder %v583_v59, 8.507059e+37 }
 0x7b4   :  { %v1390_v39 = vpop.eup %1389 }
 0x7b5   :  { %v575_v40 = vmul.f32 %v1390_v39, %v573_v38  ;;  %vm580_vm8 = vweird.f32 %v1390_v39  ;;  %v1392_v5 = vpop.eup %1391 }
 0x7b6   :  { %vm581_vm10 = vmor %vm579_vm9, %vm580_vm8  ;;  %v505_v6 = vadd.f32 1.0, %v1392_v5 }
 0x7b7   :  { %v576_v54 = vsub.f32 1.0, %v575_v40 }
 0x7b8   :  { %1393 = vrcp.f32 %v505_v6  ;;  %v517_v12 = vand.u32 2147483648, %v505_v6  ;;  %vm511_vm13 = vweird.f32 %v505_v6  ;;  %v515_v13 = vand.u32 2147483647, %v505_v6 }
 0x7b9   :  { %v577_v55 = vmul.f32 %v1390_v39, %v576_v54 }
 0x7ba   :  { %v518_v15 = vor.u32 1.1754944e-38, %v517_v12  ;;  %vm516_vm15 = vcmp.eq.f32.partialorder %v515_v13, 8.507059e+37 }
 0x7bb   :  { %v578_v57 = vadd.f32 %v1390_v39, %v577_v55 }
 0x7bd   :  { %v582_v60 = vsel %vm581_vm10, %v1390_v39, %v578_v57 }
 0x7be   :  { %v587_v62 = vsel %vm584_vm11, %v586_v61, %v582_v60  ;;  %v1394_v7 = vpop.eup %1393 }
 0x7bf   :  { %v507_v8 = vmul.f32 %v1394_v7, %v505_v6  ;;  %vm512_vm12 = vweird.f32 %v1394_v7  ;;  %v590_v19 = vmul.f32 %v587_v62, %v1908_v29 }
 0x7c0   :  { %vm513_vm14 = vmor %vm511_vm13, %vm512_vm12 }
 0x7c1   :  { %v508_v9 = vsub.f32 1.0, %v507_v8 }
 0x7c3   :  { %v509_v10 = vmul.f32 %v1394_v7, %v508_v9 }
 0x7c5   :  { %v510_v11 = vadd.f32 %v1394_v7, %v509_v10 }
 0x7c7   :  { %v514_v14 = vsel %vm513_vm14, %v1394_v7, %v510_v11 }
 0x7c8   :  { %v519_v17 = vsel %vm516_vm15, %v518_v15, %v514_v14 }
 0x7c9   :  { %v522_v23 = vmul.f32 %v519_v17, %v1913_v28 }
 0x7f7   :  { %v593_v63 = vpop.permute.xlu2 %592 }
 0x7f8   :  { %v595_v4 = vmul.f32 %v593_v63, %v587_v62 }
 0x7fa   :  { %597 = vrot.lane.b32.xlu1 %v595_v4, %s1679_s23 }
 0x81d   :  { %v525_v16 = vpop.permute.xlu0 %524 }
 0x81e   :  { %v527_v18 = vmul.f32 %v525_v16, %v519_v17 }
 0x820   :  { %529 = vrot.lane.b32.xlu2 %v527_v18, %s1679_s23 }
 0x86c   :  { %v598_v20 = vpop.permute.xlu1 %597 }
 0x86d   :  { %v1943_v21 = vadd.f32 %v598_v20, %v590_v19 }
 0x86f   :  { %1395 = vtanh.f32 %v1943_v21 }
 0x875   :  { %v1396_v22 = vpop.eup %1395 }
 0x876   :  { %603 = vrot.lane.b32.xlu0 %v1396_v22, %s1683_s2 }
 0x87a   :  { %v530_v24 = vpop.permute.xlu2 %529 }
 0x87b   :  { %v1948_v25 = vadd.f32 %v530_v24, %v522_v23 }
 0x87d   :  { %1397 = vtanh.f32 %v1948_v25 }
 0x883   :  { %v1398_v27 = vpop.eup %1397 }
 0x884   :  { %535 = vrot.lane.b32.xlu1 %v1398_v27, %s1683_s2 }
 0x8e8   :  { %v604_v34 = vpop.permute.xlu0 %603 }
 0x8e9   :  { %v606_v29 = vmul.f32 %v604_v34, %v587_v62 }
 0x8eb   :  { %608 = vrot.lane.b32.xlu2 %v606_v29, %s1679_s23 }
 0x8f6   :  { %v536_v35 = vpop.permute.xlu1 %535 }
 0x8f7   :  { %v1953_v41 = vmul.f32 %v536_v35, %v519_v17 }
 0x8f9   :  { %611 = vrot.lane.b32.xlu0 %v1953_v41, %s1683_s2 }
 0x945   :  { %v609_v43 = vpop.permute.xlu2 %608 }
 0x946   :  { %1312 = vmatmul.msk.f32.vlgmr.msrb.gmra.mxu3 %vm124_vm0, %v609_v43 }
 0x947   :  { %969 = vmatpush.msrb.mxu3 %v1754_v0 }
 0x949   :  { %970 = vmatpush.msrb.mxu3 %v1756_v1 }
 0x94b   :  { %971 = vmatpush.msrb.mxu3 %v1760_v2 }
 0x94d   :  { %972 = vmatpush.msrb.mxu3 %v1764_v3 }
 0x96b   :  { %v612_v28 = vpop.permute.xlu0 %611 }
 0x96c   :  { %v614_v44 = vsel %vm124_vm0, %v609_v43, %v612_v28 }
 0x96d   :  { %1310 = vmatmul.msk.f32.vlgmr.msrb.gmra.mxu1 %vm202_vm5, %v614_v44 }
 0x9c9   :  { %v702_v45 = vpop.f32.mrf.mxu3 }
 0x9ca   :  { %v705_v48 = vadd.f32 %v702_v45, %v682_v26 }
 0x9cc   :  { %1399 = vtanh.f32 %v705_v48  ;;  %v1313_v2 = vmul.f32 -1.442695, %v705_v48 }
 0x9d2   :  { %v1400_v33 = vpop.eup %1399 }
 0x9d3   :  { %728 = vrot.lane.b32.xlu1 %v1400_v33, %s1683_s2 }
 0x9ea   :  { %v635_v49 = vpop.f32.mrf.mxu1 }
 0x9eb   :  { %v636_v0 = vadd.f32 %v1862_v47, %v635_v49 }
 0x9ed   :  { %1401 = vtanh.f32 %v636_v0  ;;  %v1311_v3 = vmul.f32 -1.442695, %v636_v0 }
 0x9ee   :  { %1403 = vpow2.f32 %v1313_v2 }
 0x9ef   :  { %1405 = vpow2.f32 %v1311_v3 }
 0x9f3   :  { %v1402_v1 = vpop.eup %1401 }
 0x9f4   :  { %660 = vrot.lane.b32.xlu2 %v1402_v1, %s1683_s2  ;;  %v1404_v50 = vpop.eup %1403 }
 0x9f5   :  { %v709_v51 = vadd.f32 1.0, %v1404_v50  ;;  %v1406_v52 = vpop.eup %1405 }
 0x9f6   :  { %v641_v53 = vadd.f32 1.0, %v1406_v52 }
 0x9f7   :  { %1407 = vrcp.f32 %v709_v51  ;;  %v721_v40 = vand.u32 2147483648, %v709_v51  ;;  %vm715_vm2 = vweird.f32 %v709_v51  ;;  %v719_v55 = vand.u32 2147483647, %v709_v51 }
 0x9f8   :  { %1409 = vrcp.f32 %v641_v53  ;;  %v653_v63 = vand.u32 2147483648, %v641_v53  ;;  %vm647_vm7 = vweird.f32 %v641_v53  ;;  %v651_v4 = vand.u32 2147483647, %v641_v53 }
 0x9f9   :  { %v722_v57 = vor.u32 1.1754944e-38, %v721_v40  ;;  %vm720_vm4 = vcmp.eq.f32.partialorder %v719_v55, 8.507059e+37 }
 0x9fa   :  { %v654_v6 = vor.u32 1.1754944e-38, %v653_v63  ;;  %vm652_vm9 = vcmp.eq.f32.partialorder %v651_v4, 8.507059e+37 }
 0x9fd   :  { %v1408_v30 = vpop.eup %1407 }
 0x9fe   :  { %v711_v31 = vmul.f32 %v1408_v30, %v709_v51  ;;  %v1410_v36 = vpop.eup %1409  ;;  %vm716_vm1 = vweird.f32 %v1408_v30 }
 0x9ff   :  { %v643_v38 = vmul.f32 %v1410_v36, %v641_v53  ;;  %vm717_vm3 = vmor %vm715_vm2, %vm716_vm1  ;;  %vm648_vm6 = vweird.f32 %v1410_v36 }
 0xa00   :  { %v712_v32 = vsub.f32 1.0, %v711_v31  ;;  %vm649_vm8 = vmor %vm647_vm7, %vm648_vm6 }
 0xa01   :  { %v644_v54 = vsub.f32 1.0, %v643_v38 }
 0xa02   :  { %v713_v37 = vmul.f32 %v1408_v30, %v712_v32 }
 0xa03   :  { %v645_v58 = vmul.f32 %v1410_v36, %v644_v54 }
 0xa04   :  { %v714_v39 = vadd.f32 %v1408_v30, %v713_v37 }
 0xa05   :  { %v646_v62 = vadd.f32 %v1410_v36, %v645_v58 }
 0xa06   :  { %v718_v56 = vsel %vm717_vm3, %v1408_v30, %v714_v39 }
 0xa07   :  { %v723_v60 = vsel %vm720_vm4, %v722_v57, %v718_v56  ;;  %v650_v5 = vsel %vm649_vm8, %v1410_v36, %v646_v62 }
 0xa08   :  { %v655_v8 = vsel %vm652_vm9, %v654_v6, %v650_v5  ;;  %v726_v10 = vmul.f32 %v723_v60, %v1943_v21 }
 0xa09   :  { %v658_v13 = vmul.f32 %v655_v8, %v1948_v25  ;;  %v818_v25 = vld [vmem:[#allocation2 + $0xa] sm:$0x3] }
 0xa45   :  { %v729_v59 = vpop.permute.xlu1 %728 }
 0xa46   :  { %v731_v61 = vmul.f32 %v729_v59, %v723_v60 }
 0xa48   :  { %733 = vrot.lane.b32.xlu0 %v731_v61, %s1679_s23 }
 0xa4e   :  { %v661_v7 = vpop.permute.xlu2 %660 }
 0xa4f   :  { %v663_v9 = vmul.f32 %v661_v7, %v655_v8 }
 0xa51   :  { %665 = vrot.lane.b32.xlu1 %v663_v9, %s1679_s23 }
 0xaba   :  { %v734_v11 = vpop.permute.xlu0 %733 }
 0xabb   :  { %v1970_v12 = vadd.f32 %v734_v11, %v726_v10 }
 0xabd   :  { %1411 = vtanh.f32 %v1970_v12 }
 0xac3   :  { %v1412_v14 = vpop.eup %1411  ;;  %v666_v15 = vpop.permute.xlu1 %665 }
 0xac4   :  { %v1974_v16 = vadd.f32 %v666_v15, %v658_v13  ;;  %739 = vrot.lane.b32.xlu2 %v1412_v14, %s1683_s2 }
 0xac6   :  { %1413 = vtanh.f32 %v1974_v16 }
 0xacc   :  { %v1414_v17 = vpop.eup %1413 }
 0xacd   :  { %671 = vrot.lane.b32.xlu0 %v1414_v17, %s1683_s2 }
 0xb1e   :  { %v740_v18 = vpop.permute.xlu2 %739 }
 0xb1f   :  { %v742_v19 = vmul.f32 %v740_v18, %v723_v60 }
 0xb21   :  { %744 = vrot.lane.b32.xlu1 %v742_v19, %s1679_s23  ;;  %v954_v19 = vld [vmem:[#allocation2 + $0xc] sm:$0x3] }
 0xb3f   :  { %v672_v20 = vpop.permute.xlu0 %671 }
 0xb40   :  { %v1980_v21 = vmul.f32 %v672_v20, %v655_v8 }
 0xb42   :  { %747 = vrot.lane.b32.xlu2 %v1980_v21, %s1683_s2 }
 0xb93   :  { %v745_v22 = vpop.permute.xlu1 %744 }
 0xb94   :  { %1316 = vmatmul.msk.f32.vlgmr.msra.gmra.mxu2 %vm124_vm0, %v745_v22 }
 0xb9c   :  { %v748_v23 = vpop.permute.xlu2 %747 }
 0xb9d   :  { %v750_v24 = vsel %vm124_vm0, %v745_v22, %v748_v23 }
 0xb9e   :  { %1314 = vmatmul.msk.f32.vlgmr.msrb.gmra.mxu0 %vm202_vm5, %v750_v24 }
 0xc17   :  { %v838_v27 = vpop.f32.mrf.mxu2 }
 0xc18   :  { %v841_v34 = vadd.f32 %v838_v27, %v818_v25 }
 0xc1a   :  { %1415 = vtanh.f32 %v841_v34  ;;  %v1317_v44 = vmul.f32 -1.442695, %v841_v34 }
 0xc1b   :  { %v771_v29 = vpop.f32.mrf.mxu0 }
 0xc1c   :  { %v772_v35 = vadd.f32 %v1862_v47, %v771_v29 }
 0xc1e   :  { %1417 = vtanh.f32 %v772_v35  ;;  %v1315_v26 = vmul.f32 -1.442695, %v772_v35 }
 0xc1f   :  { %1419 = vpow2.f32 %v1317_v44 }
 0xc20   :  { %v1416_v43 = vpop.eup %1415  ;;  %1421 = vpow2.f32 %v1315_v26 }
 0xc21   :  { %864 = vrot.lane.b32.xlu1 %v1416_v43, %s1683_s2 }
 0xc24   :  { %v1418_v28 = vpop.eup %1417 }
 0xc25   :  { %796 = vrot.lane.b32.xlu0 %v1418_v28, %s1683_s2  ;;  %v1420_v45 = vpop.eup %1419 }
 0xc26   :  { %v845_v48 = vadd.f32 1.0, %v1420_v45  ;;  %v1422_v33 = vpop.eup %1421 }
 0xc27   :  { %v777_v49 = vadd.f32 1.0, %v1422_v33 }
 0xc28   :  { %1423 = vrcp.f32 %v845_v48  ;;  %v857_v31 = vand.u32 2147483648, %v845_v48  ;;  %vm851_vm11 = vweird.f32 %v845_v48  ;;  %v855_v32 = vand.u32 2147483647, %v845_v48 }
 0xc29   :  { %1425 = vrcp.f32 %v777_v49  ;;  %v789_v39 = vand.u32 2147483648, %v777_v49  ;;  %vm783_vm15 = vweird.f32 %v777_v49  ;;  %v787_v40 = vand.u32 2147483647, %v777_v49 }
 0xc2a   :  { %v858_v38 = vor.u32 1.1754944e-38, %v857_v31  ;;  %vm856_vm14 = vcmp.eq.f32.partialorder %v855_v32, 8.507059e+37 }
 0xc2b   :  { %v790_v58 = vor.u32 1.1754944e-38, %v789_v39  ;;  %vm788_vm2 = vcmp.eq.f32.partialorder %v787_v40, 8.507059e+37 }
 0xc2e   :  { %v1424_v0 = vpop.eup %1423 }
 0xc2f   :  { %v847_v1 = vmul.f32 %v1424_v0, %v845_v48  ;;  %v1426_v2 = vpop.eup %1425  ;;  %vm852_vm10 = vweird.f32 %v1424_v0 }
 0xc30   :  { %v779_v50 = vmul.f32 %v1426_v2, %v777_v49  ;;  %vm853_vm12 = vmor %vm851_vm11, %vm852_vm10  ;;  %vm784_vm13 = vweird.f32 %v1426_v2 }
 0xc31   :  { %v848_v3 = vsub.f32 1.0, %v847_v1  ;;  %vm785_vm1 = vmor %vm783_vm15, %vm784_vm13 }
 0xc32   :  { %v780_v52 = vsub.f32 1.0, %v779_v50 }
 0xc33   :  { %v849_v51 = vmul.f32 %v1424_v0, %v848_v3 }
 0xc34   :  { %v781_v30 = vmul.f32 %v1426_v2, %v780_v52 }
 0xc35   :  { %v850_v53 = vadd.f32 %v1424_v0, %v849_v51 }
 0xc36   :  { %v782_v37 = vadd.f32 %v1426_v2, %v781_v30 }
 0xc37   :  { %v854_v36 = vsel %vm853_vm12, %v1424_v0, %v850_v53 }
 0xc38   :  { %v859_v55 = vsel %vm856_vm14, %v858_v38, %v854_v36  ;;  %v786_v57 = vsel %vm785_vm1, %v1426_v2, %v782_v37 }
 0xc39   :  { %v791_v60 = vsel %vm788_vm2, %v790_v58, %v786_v57  ;;  %v862_v6 = vmul.f32 %v859_v55, %v1970_v12 }
 0xc3a   :  { %v794_v62 = vmul.f32 %v791_v60, %v1974_v16 }
 0xc93   :  { %v865_v54 = vpop.permute.xlu1 %864 }
 0xc94   :  { %v867_v56 = vmul.f32 %v865_v54, %v859_v55 }
 0xc96   :  { %869 = vrot.lane.b32.xlu0 %v867_v56, %s1679_s23 }
 0xc97   :  { %v797_v59 = vpop.permute.xlu0 %796 }
 0xc98   :  { %v799_v61 = vmul.f32 %v797_v59, %v791_v60 }
 0xc9a   :  { %801 = vrot.lane.b32.xlu2 %v799_v61, %s1679_s23 }
 0xcf4   :  { %v802_v63 = vpop.permute.xlu2 %801 }
 0xcf5   :  { %v1993_v4 = vadd.f32 %v802_v63, %v794_v62 }
 0xcf7   :  { %1427 = vtanh.f32 %v1993_v4 }
 0xcfd   :  { %v1428_v5 = vpop.eup %1427 }
 0xcfe   :  { %807 = vrot.lane.b32.xlu1 %v1428_v5, %s1683_s2 }
 0xd08   :  { %v870_v7 = vpop.permute.xlu0 %869 }
 0xd09   :  { %v1998_v8 = vadd.f32 %v870_v7, %v862_v6 }
 0xd0b   :  { %1429 = vtanh.f32 %v1998_v8 }
 0xd11   :  { %v1430_v9 = vpop.eup %1429 }
 0xd12   :  { %875 = vrot.lane.b32.xlu2 %v1430_v9, %s1683_s2 }
 0xd6c   :  { %v876_v10 = vpop.permute.xlu2 %875 }
 0xd6d   :  { %v878_v11 = vmul.f32 %v876_v10, %v859_v55  ;;  %v1090_v10 = vld [vmem:[#allocation2 + $0xe] sm:$0x3] }
 0xd6f   :  { %880 = vrot.lane.b32.xlu0 %v878_v11, %s1679_s23 }
 0xd70   :  { %v808_v13 = vpop.permute.xlu1 %807 }
 0xd71   :  { %v2003_v14 = vmul.f32 %v808_v13, %v791_v60 }
 0xd73   :  { %883 = vrot.lane.b32.xlu1 %v2003_v14, %s1683_s2 }
 0xde1   :  { %v881_v15 = vpop.permute.xlu0 %880 }
 0xde5   :  { %v884_v12 = vpop.permute.xlu1 %883 }
 0xde6   :  { %v886_v16 = vsel %vm124_vm0, %v881_v15, %v884_v12 }
 0xde7   :  { %1318 = vmatmul.msk.f32.vlgmr.msra.gmra.mxu3 %vm202_vm5, %v886_v16 }
 0xdef   :  { %1320 = vmatmul.msk.f32.vlgmr.msrb.gmra.mxu3 %vm124_vm0, %v881_v15 }
 0xe6a   :  { %v907_v17 = vpop.f32.mrf.mxu3 }
 0xe6b   :  { %v908_v18 = vadd.f32 %v1862_v47, %v907_v17 }
 0xe6d   :  { %1431 = vtanh.f32 %v908_v18  ;;  %v1319_v25 = vmul.f32 -1.442695, %v908_v18 }
 0xe72   :  { %v974_v20 = vpop.f32.mrf.mxu3 }
 0xe73   :  { %v1432_v22 = vpop.eup %1431  ;;  %v977_v23 = vadd.f32 %v974_v20, %v954_v19 }
 0xe74   :  { %932 = vrot.lane.b32.xlu2 %v1432_v22, %s1683_s2 }
 0xe75   :  { %1433 = vtanh.f32 %v977_v23  ;;  %v1321_v28 = vmul.f32 -1.442695, %v977_v23 }
 0xe76   :  { %1435 = vpow2.f32 %v1319_v25 }
 0xe7b   :  { %v1434_v24 = vpop.eup %1433 }
 0xe7c   :  { %1000 = vrot.lane.b32.xlu0 %v1434_v24, %s1683_s2  ;;  %v1436_v27 = vpop.eup %1435 }
 0xe7d   :  { %v913_v34 = vadd.f32 1.0, %v1436_v27 }
 0xe7f   :  { %1437 = vrcp.f32 %v913_v34  ;;  %v925_v45 = vand.u32 2147483648, %v913_v34  ;;  %vm919_vm4 = vweird.f32 %v913_v34  ;;  %v923_v48 = vand.u32 2147483647, %v913_v34 }
 0xe80   :  { %1439 = vpow2.f32 %v1321_v28 }
 0xe81   :  { %v926_v0 = vor.u32 1.1754944e-38, %v925_v45  ;;  %vm924_vm7 = vcmp.eq.f32.partialorder %v923_v48, 8.507059e+37 }
 0xe85   :  { %v1438_v29 = vpop.eup %1437 }
 0xe86   :  { %v915_v35 = vmul.f32 %v1438_v29, %v913_v34  ;;  %vm920_vm3 = vweird.f32 %v1438_v29  ;;  %v1440_v33 = vpop.eup %1439 }
 0xe87   :  { %vm921_vm6 = vmor %vm919_vm4, %vm920_vm3  ;;  %v981_v1 = vadd.f32 1.0, %v1440_v33 }
 0xe88   :  { %v916_v43 = vsub.f32 1.0, %v915_v35 }
 0xe89   :  { %1441 = vrcp.f32 %v981_v1  ;;  %v993_v32 = vand.u32 2147483648, %v981_v1  ;;  %vm987_vm9 = vweird.f32 %v981_v1  ;;  %v991_v36 = vand.u32 2147483647, %v981_v1 }
 0xe8a   :  { %v917_v44 = vmul.f32 %v1438_v29, %v916_v43 }
 0xe8b   :  { %v994_v38 = vor.u32 1.1754944e-38, %v993_v32  ;;  %vm992_vm11 = vcmp.eq.f32.partialorder %v991_v36, 8.507059e+37 }
 0xe8c   :  { %v918_v26 = vadd.f32 %v1438_v29, %v917_v44 }
 0xe8e   :  { %v922_v49 = vsel %vm921_vm6, %v1438_v29, %v918_v26  ;;  %vm271_vm6 = vcmask 254976  }
 0xe8f   :  { %v927_v3 = vsel %vm924_vm7, %v926_v0, %v922_v49  ;;  %v1442_v51 = vpop.eup %1441 }
 0xe90   :  { %v983_v52 = vmul.f32 %v1442_v51, %v981_v1  ;;  %vm988_vm8 = vweird.f32 %v1442_v51  ;;  %v930_v55 = vmul.f32 %v927_v3, %v1993_v4 }
 0xe91   :  { %vm989_vm10 = vmor %vm987_vm9, %vm988_vm8 }
 0xe92   :  { %v984_v53 = vsub.f32 1.0, %v983_v52 }
 0xe94   :  { %v985_v30 = vmul.f32 %v1442_v51, %v984_v53 }
 0xe96   :  { %v986_v31 = vadd.f32 %v1442_v51, %v985_v30 }
 0xe98   :  { %v990_v37 = vsel %vm989_vm10, %v1442_v51, %v986_v31 }
 0xe99   :  { %v995_v40 = vsel %vm992_vm11, %v994_v38, %v990_v37 }
 0xe9a   :  { %v998_v58 = vmul.f32 %v995_v40, %v1998_v8 }
 0xece   :  { %v933_v2 = vpop.permute.xlu2 %932 }
 0xecf   :  { %v935_v50 = vmul.f32 %v933_v2, %v927_v3 }
 0xed1   :  { %937 = vrot.lane.b32.xlu1 %v935_v50, %s1679_s23 }
 0xeee   :  { %v1001_v39 = vpop.permute.xlu0 %1000 }
 0xeef   :  { %v1003_v54 = vmul.f32 %v1001_v39, %v995_v40 }
 0xef1   :  { %1005 = vrot.lane.b32.xlu2 %v1003_v54, %s1679_s23 }
 0xf43   :  { %v938_v56 = vpop.permute.xlu1 %937 }
 0xf44   :  { %v2016_v57 = vadd.f32 %v938_v56, %v930_v55 }
 0xf46   :  { %1443 = vtanh.f32 %v2016_v57 }
 0xf4b   :  { %v1006_v59 = vpop.permute.xlu2 %1005 }
 0xf4c   :  { %v1444_v60 = vpop.eup %1443  ;;  %v2020_v61 = vadd.f32 %v1006_v59, %v998_v58 }
 0xf4d   :  { %943 = vrot.lane.b32.xlu0 %v1444_v60, %s1683_s2 }
 0xf4e   :  { %1445 = vtanh.f32 %v2020_v61 }
 0xf54   :  { %v1446_v62 = vpop.eup %1445 }
 0xf55   :  { %1011 = vrot.lane.b32.xlu1 %v1446_v62, %s1683_s2 }
 0xfbf   :  { %v944_v63 = vpop.permute.xlu0 %943 }
 0xfc0   :  { %v2025_v4 = vmul.f32 %v944_v63, %v927_v3 }
 0xfc2   :  { %1019 = vrot.lane.b32.xlu0 %v2025_v4, %s1683_s2 }
 0xfc7   :  { %v1012_v5 = vpop.permute.xlu1 %1011 }
 0xfc8   :  { %v1014_v6 = vmul.f32 %v1012_v5, %v995_v40  ;;  %v1471_v5 = vld [vmem:[#allocation8] ss:$0 sm:$0xff] }
 0xfca   :  { %1016 = vrot.lane.b32.xlu2 %v1014_v6, %s1679_s23 }
0x1024   :  { %v1017_v7 = vpop.permute.xlu2 %1016 }
0x1025   :  { %1324 = vmatmul.msk.f32.vlgmr.msra.gmra.mxu0 %vm124_vm0, %v1017_v7 }
0x1034   :  { %v1020_v8 = vpop.permute.xlu0 %1019 }
0x1035   :  { %v1022_v9 = vsel %vm124_vm0, %v1017_v7, %v1020_v8 }
0x1036   :  { %1322 = vmatmul.msk.f32.vlgmr.msrb.gmra.mxu2 %vm202_vm5, %v1022_v9 }
0x10a2   :  { %v1110_v11 = vpop.f32.mrf.mxu0 }
0x10a3   :  { %v1113_v13 = vadd.f32 %v1110_v11, %v1090_v10 }
0x10a5   :  { %1447 = vtanh.f32 %v1113_v13  ;;  %v1325_v18 = vmul.f32 -1.442695, %v1113_v13 }
0x10ab   :  { %v1448_v15 = vpop.eup %1447 }
0x10ac   :  { %1136 = vrot.lane.b32.xlu2 %v1448_v15, %s1683_s2 }
0x10b9   :  { %v1043_v12 = vpop.f32.mrf.mxu2 }
0x10ba   :  { %v1044_v16 = vadd.f32 %v1862_v47, %v1043_v12 }
0x10bc   :  { %1449 = vtanh.f32 %v1044_v16  ;;  %v1323_v26 = vmul.f32 -1.442695, %v1044_v16 }
0x10bd   :  { %1451 = vpow2.f32 %v1325_v18 }
0x10c2   :  { %v1450_v17 = vpop.eup %1449 }
0x10c3   :  { %1068 = vrot.lane.b32.xlu1 %v1450_v17, %s1683_s2  ;;  %v1452_v19 = vpop.eup %1451 }
0x10c4   :  { %v1117_v20 = vadd.f32 1.0, %v1452_v19 }
0x10c6   :  { %1453 = vrcp.f32 %v1117_v20  ;;  %v1129_v34 = vand.u32 2147483648, %v1117_v20  ;;  %vm1123_vm13 = vweird.f32 %v1117_v20  ;;  %v1127_v29 = vand.u32 2147483647, %v1117_v20 }
0x10c7   :  { %1455 = vpow2.f32 %v1323_v26 }
0x10c8   :  { %v1130_v35 = vor.u32 1.1754944e-38, %v1129_v34  ;;  %vm1128_vm15 = vcmp.eq.f32.partialorder %v1127_v29, 8.507059e+37 }
0x10cc   :  { %v1454_v22 = vpop.eup %1453 }
0x10cd   :  { %v1119_v23 = vmul.f32 %v1454_v22, %v1117_v20  ;;  %vm1124_vm12 = vweird.f32 %v1454_v22  ;;  %v1456_v45 = vpop.eup %1455 }
0x10ce   :  { %vm1125_vm14 = vmor %vm1123_vm13, %vm1124_vm12  ;;  %v1049_v48 = vadd.f32 1.0, %v1456_v45 }
0x10cf   :  { %v1120_v24 = vsub.f32 1.0, %v1119_v23 }
0x10d0   :  { %1457 = vrcp.f32 %v1049_v48  ;;  %v1061_v3 = vand.u32 2147483648, %v1049_v48  ;;  %vm1055_vm2 = vweird.f32 %v1049_v48  ;;  %v1059_v50 = vand.u32 2147483647, %v1049_v48 }
0x10d1   :  { %v1121_v25 = vmul.f32 %v1454_v22, %v1120_v24 }
0x10d2   :  { %v1062_v52 = vor.u32 1.1754944e-38, %v1061_v3  ;;  %vm1060_vm4 = vcmp.eq.f32.partialorder %v1059_v50, 8.507059e+37 }
0x10d3   :  { %v1122_v27 = vadd.f32 %v1454_v22, %v1121_v25 }
0x10d5   :  { %v1126_v47 = vsel %vm1125_vm14, %v1454_v22, %v1122_v27 }
0x10d6   :  { %v1131_v28 = vsel %vm1128_vm15, %v1130_v35, %v1126_v47  ;;  %v1458_v33 = vpop.eup %1457 }
0x10d7   :  { %v1051_v49 = vmul.f32 %v1458_v33, %v1049_v48  ;;  %vm1056_vm1 = vweird.f32 %v1458_v33  ;;  %v1134_v32 = vmul.f32 %v1131_v28, %v2020_v61 }
0x10d8   :  { %vm1057_vm3 = vmor %vm1055_vm2, %vm1056_vm1 }
0x10d9   :  { %v1052_v0 = vsub.f32 1.0, %v1051_v49 }
0x10db   :  { %v1053_v1 = vmul.f32 %v1458_v33, %v1052_v0 }
0x10dd   :  { %v1054_v2 = vadd.f32 %v1458_v33, %v1053_v1 }
0x10df   :  { %v1058_v51 = vsel %vm1057_vm3, %v1458_v33, %v1054_v2 }
0x10e0   :  { %v1063_v30 = vsel %vm1060_vm4, %v1062_v52, %v1058_v51 }
0x10e1   :  { %v1066_v39 = vmul.f32 %v1063_v30, %v2016_v57 }
0x1106   :  { %v1137_v43 = vpop.permute.xlu2 %1136 }
0x1107   :  { %v1139_v44 = vmul.f32 %v1137_v43, %v1131_v28 }
0x1109   :  { %1141 = vrot.lane.b32.xlu1 %v1139_v44, %s1679_s23 }
0x1135   :  { %v1069_v53 = vpop.permute.xlu1 %1068 }
0x1136   :  { %v1071_v31 = vmul.f32 %v1069_v53, %v1063_v30 }
0x1138   :  { %1073 = vrot.lane.b32.xlu0 %v1071_v31, %s1679_s23 }
0x117b   :  { %v1142_v36 = vpop.permute.xlu1 %1141 }
0x117c   :  { %v2039_v37 = vadd.f32 %v1142_v36, %v1134_v32 }
0x117e   :  { %1459 = vtanh.f32 %v2039_v37 }
0x1184   :  { %v1460_v38 = vpop.eup %1459 }
0x1185   :  { %1147 = vrot.lane.b32.xlu0 %v1460_v38, %s1683_s2 }
0x11aa   :  { %v1074_v40 = vpop.permute.xlu0 %1073 }
0x11ab   :  { %v1076_v54 = vadd.f32 %v1074_v40, %v1066_v39 }
0x11ad   :  { %1461 = vtanh.f32 %v1076_v54 }
0x11b3   :  { %v1462_v55 = vpop.eup %1461 }
0x11b4   :  { %1079 = vrot.lane.b32.xlu2 %v1462_v55, %s1683_s2 }
0x11f7   :  { %v1148_v56 = vpop.permute.xlu0 %1147 }
0x11f8   :  { %v1150_v58 = vmul.f32 %v1148_v56, %v1131_v28 }
0x11fa   :  { %1152 = vrot.lane.b32.xlu1 %v1150_v58, %s1679_s23 }
0x120e   :  { %v1080_v59 = vpop.permute.xlu2 %1079 }
0x120f   :  { %v1082_v60 = vmul.f32 %v1080_v59, %v1063_v30 }
0x1211   :  { %1155 = vrot.lane.b32.xlu2 %v1082_v60, %s1683_s2 }
0x126b   :  { %v1156_v61 = vpop.permute.xlu2 %1155 }
0x126c   :  { %v1153_v62 = vpop.permute.xlu1 %1152 }
0x126d   :  { %v1158_v63 = vsel %vm124_vm0, %v1153_v62, %v1156_v61  ;;  %1225 = vst.msk [vmem:[#allocation12] sm:$0x3] %vm271_vm6, %v1153_v62 }
0x126e   :  { %1326 = vmatmul.msk.f32.vlgmr.msra.gmra.mxu1 %vm202_vm5, %v1158_v63 }
0x12eb   :  { %v1179_v57 = vpop.f32.mrf.mxu1 }
0x12ec   :  { %v1180_v6 = vadd.f32 %v1471_v5, %v1179_v57 }
0x12ee   :  { %1463 = vtanh.f32 %v1180_v6  ;;  %v1327_v8 = vmul.f32 -1.442695, %v1180_v6 }
0x12f0   :  { %1465 = vpow2.f32 %v1327_v8 }
0x12f4   :  { %v1464_v7 = vpop.eup %1463 }
0x12f5   :  { %1204 = vrot.lane.b32.xlu0 %v1464_v7, %s1683_s2 }
0x12f6   :  { %v1466_v9 = vpop.eup %1465 }
0x12f7   :  { %v1185_v10 = vadd.f32 1.0, %v1466_v9 }
0x12f9   :  { %1467 = vrcp.f32 %v1185_v10  ;;  %v1197_v17 = vand.u32 2147483648, %v1185_v10  ;;  %vm1191_vm5 = vweird.f32 %v1185_v10  ;;  %v1195_v18 = vand.u32 2147483647, %v1185_v10 }
0x12fb   :  { %vm1196_vm8 = vcmp.eq.f32.partialorder %v1195_v18, 8.507059e+37 }
0x12fd   :  { %540 = vrot.lane.b32.xlu0 %v1953_v41, %s1679_s23  ;;  %v1198_v41 = vor.u32 1.1754944e-38, %v1197_v17 }
0x12ff   :  { %v1468_v11 = vpop.eup %1467 }
0x1300   :  { %v1187_v13 = vmul.f32 %v1468_v11, %v1185_v10  ;;  %vm1192_vm0 = vweird.f32 %v1468_v11 }
0x1301   :  { %vm1193_vm7 = vmor %vm1191_vm5, %vm1192_vm0 }
0x1302   :  { %v1188_v15 = vsub.f32 1.0, %v1187_v13 }
0x1304   :  { %v1189_v12 = vmul.f32 %v1468_v11, %v1188_v15 }
0x1305   :  { %948 = vrot.lane.b32.xlu0 %v2025_v4, %s1679_s23 }
0x1306   :  { %v1190_v16 = vadd.f32 %v1468_v11, %v1189_v12 }
0x1308   :  { %v1194_v19 = vsel %vm1193_vm7, %v1468_v11, %v1190_v16 }
0x1309   :  { %v1199_v4 = vsel %vm1196_vm8, %v1198_v41, %v1194_v19 }
0x130a   :  { %v1202_v25 = vmul.f32 %v1199_v4, %v1076_v54 }
0x1367   :  { %v1205_v20 = vpop.permute.xlu0 %1204 }
0x1368   :  { %v1207_v22 = vmul.f32 %v1205_v20, %v1199_v4 }
0x136a   :  { %1209 = vrot.lane.b32.xlu1 %v1207_v22, %s1679_s23 }
0x136f   :  { %v541_v23 = vpop.permute.xlu0 %540 }
0x1370   :  { %544 = vst.msk [vmem:[#allocation11 + $0x4] sm:$0x3] %vm271_vm6, %v541_v23 }
0x1372   :  { %268 = vrot.lane.b32.xlu1 %v1878_v42, %s1679_s23 }
0x1377   :  { %v949_v24 = vpop.permute.xlu0 %948 }
0x1378   :  { %952 = vst.msk [vmem:[#allocation11 + $0xa] sm:$0x3] %vm271_vm6, %v949_v24 }
0x137a   :  { %676 = vrot.lane.b32.xlu1 %v1980_v21, %s1679_s23 }
0x1382   :  { %1084 = vrot.lane.b32.xlu1 %v1082_v60, %s1679_s23 }
0x13dc   :  { %v1210_v27 = vpop.permute.xlu1 %1209 }
0x13dd   :  { %v1212_v34 = vadd.f32 %v1210_v27, %v1202_v25 }
0x13df   :  { %1469 = vtanh.f32 %v1212_v34 }
0x13e4   :  { %v269_v29 = vpop.permute.xlu1 %268 }
0x13e5   :  { %v1470_v47 = vpop.eup %1469  ;;  %272 = vst.msk [vmem:[#allocation11] sm:$0x3] %vm271_vm6, %v269_v29 }
0x13e6   :  { %1215 = vrot.lane.b32.xlu2 %v1470_v47, %s1683_s2 }
0x13ec   :  { %v677_v35 = vpop.permute.xlu1 %676 }
0x13ed   :  { %680 = vst.msk [vmem:[#allocation11 + $0x6] sm:$0x3] %vm271_vm6, %v677_v35 }
0x13ee   :  { %404 = vrot.lane.b32.xlu2 %v1918_v46, %s1679_s23 }
0x13f4   :  { %v1085_v42 = vpop.permute.xlu1 %1084 }
0x13f5   :  { %1088 = vst.msk [vmem:[#allocation11 + $0xc] sm:$0x3] %vm271_vm6, %v1085_v42 }
0x13f6   :  { %812 = vrot.lane.b32.xlu2 %v2003_v14, %s1679_s23 }
0x13fe   :  { %1227 = vrot.lane.b32.xlu2 %v2039_v37, %s1684_s5 }
0x1440   :  { %v1216_v21 = vpop.permute.xlu2 %1215 }
0x1441   :  { %v1218_v43 = vmul.f32 %v1216_v21, %v1199_v4 }
0x1443   :  { %1220 = vrot.lane.b32.xlu0 %v1218_v43, %s1679_s23 }
0x1448   :  { %v405_v28 = vpop.permute.xlu2 %404 }
0x1449   :  { %408 = vst.msk [vmem:[#allocation11 + $0x2] sm:$0x3] %vm271_vm6, %v405_v28 }
0x144b   :  { %1234 = vrot.lane.b32.xlu0 %v1212_v34, %s1684_s5 }
0x1450   :  { %v813_v44 = vpop.permute.xlu2 %812 }
0x1451   :  { %816 = vst.msk [vmem:[#allocation11 + $0x8] sm:$0x3] %vm271_vm6, %v813_v44 }
0x1458   :  { %v1228_v46 = vpop.permute.xlu2 %1227 }
0x1459   :  { %1230 = vst.msk [vmem:[#allocation14] sm:$0x3] %vm271_vm6, %v1228_v46 }
0x14b5   :  { %v1221_v14 = vpop.permute.xlu0 %1220 }
0x14b6   :  { %1224 = vst.msk [vmem:[#allocation11 + $0xe] sm:$0x3] %vm271_vm6, %v1221_v14 }
0x14b7   :  { %1232 = vst.msk [vmem:[#allocation12 + $0x2] sm:$0x3] %vm271_vm6, %v1221_v14  ;;  %1251 = dma.vmem_to_hbm [thread:$0]  %s1244_s13, 256, %s1246_s16, [#allocation4], %s1679_s23, %s1679_s23, %s1680_s24  }
0x14b8   :  { %1264 = dma.vmem_to_hbm [thread:$0]  %s1257_s18, 64, %s1259_s20, [#allocation13], %s1679_s23, %s1679_s23, %s1680_s24  }
0x14bd   :  { %v1235_v26 = vpop.permute.xlu0 %1234 }
0x14be   :  { %1238 = vst.msk [vmem:[#allocation14 + $0x2] sm:$0x3] %vm271_vm6, %v1235_v26 }
0x14bf   :  { %1277 = dma.vmem_to_hbm [thread:$0]  %s1270_s21, 64, %s1272_s3, [#allocation13], %s1679_s23, %s1679_s23, %s1680_s24  }
0x14c0   :  { %1670 = dma.done.wait [#allocation4], 256  }
0x14c1   :  { %1671 = vsyncadd [#allocation4], 4294967040 }
0x14c2   :  { %1672 = dma.done.wait [#allocation13], 128  }
0x14c3   :  { %1673 = vsyncadd [#allocation13], 4294967168 }
0x14c4   :  { %1290 = vsyncpa [#allocation3], 1 }
0x14c5   :  { %1291 = vsyncpa [#allocation6], 1 }
0x14c6   :  { %1292 = vsyncpa [#allocation9], 1 }
0x14c7   :  { %1293 = vsyncpa [#allocation4], 1 }
0x14c8   :  { %1294 = vsyncpa [#allocation13], 1 }

</bundles_post_ra>
